<compile_context>
chip_gen: v7x
topology: tpu7x:2x2x1
jax: 0.10.0
libtpu: 0.0.40
codegen_flags: <defaults>
</compile_context>

<pallas_src>
import math

import jax
import jax.numpy as jnp
from jax.experimental import pallas as pl
from jax.experimental.pallas import tpu as pltpu

# ----------------------- tiny synthetic config -----------------------------
B = 2            # batch
S = 8            # sequence length
H = 128          # hidden size (lane-dense: multiple of 128)
NH = 2           # attention heads
DH = H // NH     # head dim
IT = 4 * H       # intermediate (FFN) size
L = 2            # transformer layers
VOCAB = 128
MAXPOS = 32
EPS = 1e-5       # RoBERTa / PhoBERT layer_norm_eps
NUM_OUT = 5      # emotion / metaphor / setting / motion / prompt
SCALE = 1.0 / math.sqrt(DH)


# ----------------------- in-kernel helpers ---------------------------------
def _layernorm(x, gamma, beta):
    mu = jnp.mean(x, axis=-1, keepdims=True)
    var = jnp.mean((x - mu) ** 2, axis=-1, keepdims=True)
    return (x - mu) * jax.lax.rsqrt(var + EPS) * gamma + beta


def _softmax(x):
    m = jnp.max(x, axis=-1, keepdims=True)
    e = jnp.exp(x - m)
    # reciprocal on the EUP slot instead of a VALU divide
    return e * pl.reciprocal(jnp.sum(e, axis=-1, keepdims=True), approx=True)


# ----------------------- fused Pallas kernel -------------------------------
def fused_kernel(emb_ref, mask_ref, embg_ref, embb_ref,
                 wqkv_ref, bqkv_ref, wo_ref, bo_ref, ln1g_ref, ln1b_ref,
                 wi_ref, bi_ref, wd_ref, bd_ref, ln2g_ref, ln2b_ref,
                 clsw_ref, clsb_ref,
                 logits_ref, h_ref):
    l = pl.program_id(0)

    # ---- grid step 0: embedding LayerNorm -> resident hidden state ----
    @pl.when(l == 0)
    def _():
        h_ref[...] = _layernorm(emb_ref[...], embg_ref[...], embb_ref[...])

    x = h_ref[...]                                            # (B*S, H)

    # ---- self attention ----
    qkv = jnp.dot(x, wqkv_ref[...],
                  preferred_element_type=jnp.float32) + bqkv_ref[...]
    q = qkv[:, :H] * SCALE                                    # scale folded once
    k = qkv[:, H:2 * H]
    v = qkv[:, 2 * H:]

    # head-batched layout (NH*B, S, DH) via static lane slices; all heads and
    # batches go through ONE batched contraction (no per-head matmuls, no .T)
    def split_heads(m):
        m3 = m.reshape(B, S, H)
        return jnp.concatenate(
            [m3[:, :, h * DH:(h + 1) * DH] for h in range(NH)], axis=0)

    qh, kh, vh = split_heads(q), split_heads(k), split_heads(v)

    neg = jnp.concatenate([mask_ref[...]] * NH, axis=0)       # (NH*B, 1, S)
    scores = jnp.einsum("bqd,bkd->bqk", qh, kh,
                        preferred_element_type=jnp.float32) + neg
    probs = _softmax(scores)
    ctx_h = jnp.einsum("bqk,bkd->bqd", probs, vh,
                       preferred_element_type=jnp.float32)    # (NH*B, S, DH)
    ctx = jnp.concatenate(
        [ctx_h[h * B:(h + 1) * B] for h in range(NH)], axis=-1
    ).reshape(B * S, H)

    attn = jnp.dot(ctx, wo_ref[...],
                   preferred_element_type=jnp.float32) + bo_ref[...]
    h1 = _layernorm(x + attn, ln1g_ref[...], ln1b_ref[...])

    # ---- feed forward ----
    # TODO(synk): HF RoBERTa/PhoBERT 'gelu' is erf-based; erf has no Mosaic
    # lowering, so the tanh approximation is used (max deviation ~1e-3).
    inter = jax.nn.gelu(
        jnp.dot(h1, wi_ref[...], preferred_element_type=jnp.float32)
        + bi_ref[...])
    ffn = jnp.dot(inter, wd_ref[...],
                  preferred_element_type=jnp.float32) + bd_ref[...]
    h_new = _layernorm(h1 + ffn, ln2g_ref[...], ln2b_ref[...])
    h_ref[...] = h_new

    # ---- last step: CLS pool + fused 5-way classifier ----
    # dropout(p=0.1) is identity in eval mode.
    @pl.when(l == L - 1)
    def _():
        pooled = h_new.reshape(B, S, H)[:, 0, :]              # (B, H) CLS rows
        logits_ref[...] = (jnp.dot(pooled, clsw_ref[...],
                                   preferred_element_type=jnp.float32)
                           + clsb_ref[...])


# ----------------------- wrapper --------------------------------------------
def fused_forward_call(emb2d, neg_mask, p):
    const2d = lambda shape: pl.BlockSpec(shape, lambda l: (0, 0))
    const3d = lambda shape: pl.BlockSpec(shape, lambda l: (0, 0, 0))
    per_layer = lambda shape: pl.BlockSpec((None,) + shape, lambda l: (l, 0, 0))

    grid_spec = pltpu.PrefetchScalarGridSpec(
        num_scalar_prefetch=0,
        grid=(L,),
        in_specs=[
            const2d((B * S, H)),                 # post-embedding sum
            const3d((B, 1, S)),                  # additive attention mask
            const2d((1, H)), const2d((1, H)),    # embedding LN gamma/beta
            per_layer((H, 3 * H)), per_layer((1, 3 * H)),   # Wqkv, bqkv
            per_layer((H, H)), per_layer((1, H)),           # Wo, bo
            per_layer((1, H)), per_layer((1, H)),           # LN1 gamma/beta
            per_layer((H, IT)), per_layer((1, IT)),         # Wi, bi
            per_layer((IT, H)), per_layer((1, H)),          # Wd, bd
            per_layer((1, H)), per_layer((1, H)),           # LN2 gamma/beta
            const2d((H, NUM_OUT)), const2d((1, NUM_OUT)),   # stacked classifier
        ],
        out_specs=pl.BlockSpec((B, NUM_OUT), lambda l: (0, 0)),
        scratch_shapes=[pltpu.VMEM((B * S, H), jnp.float32)],  # resident hidden
    )

    return pl.pallas_call(
        fused_kernel,
        out_shape=jax.ShapeDtypeStruct((B, NUM_OUT), jnp.float32),
        grid_spec=grid_spec,
        compiler_params=pltpu.CompilerParams(
            dimension_semantics=("arbitrary",)),  # layer axis is sequential
    )(emb2d, neg_mask,
      p["emb_ln_g"], p["emb_ln_b"],
      p["wqkv"], p["bqkv"], p["wo"], p["bo"], p["ln1g"], p["ln1b"],
      p["wi"], p["bi"], p["wd"], p["bd"], p["ln2g"], p["ln2b"],
      p["cls_w"], p["cls_b"])


# ----------------------- parameter construction ----------------------------
def init_params(key):
    std = 0.02
    keys = iter(jax.random.split(key, 16))
    nrm = lambda shape: (std * jax.random.normal(next(keys), shape)).astype(jnp.float32)

    return {
        "word_emb": nrm((VOCAB, H)),
        "pos_emb": nrm((MAXPOS, H)),
        "type_emb": nrm((1, H)),
        "emb_ln_g": jnp.ones((1, H), jnp.float32),
        "emb_ln_b": jnp.zeros((1, H), jnp.float32),
        # per-layer weights stacked along a leading L axis (one pallas_call)
        "wqkv": nrm((L, H, 3 * H)),
        "bqkv": jnp.zeros((L, 1, 3 * H), jnp.float32),
        "wo": nrm((L, H, H)),
        "bo": jnp.zeros((L, 1, H), jnp.float32),
        "ln1g": jnp.ones((L, 1, H), jnp.float32),
        "ln1b": jnp.zeros((L, 1, H), jnp.float32),
        "wi": nrm((L, H, IT)),
        "bi": jnp.zeros((L, 1, IT), jnp.float32),
        "wd": nrm((L, IT, H)),
        "bd": jnp.zeros((L, 1, H), jnp.float32),
        "ln2g": jnp.ones((L, 1, H), jnp.float32),
        "ln2b": jnp.zeros((L, 1, H), jnp.float32),
        # 5 separate nn.Linear(H, 1), concatenated along dim=1 == one [H, 5] matmul
        "cls_w": nrm((H, NUM_OUT)),
        "cls_b": jnp.zeros((1, NUM_OUT), jnp.float32),
    }


# ----------------------- full forward ---------------------------------------
def forward(params, input_ids, attention_mask):
    # embeddings (glue: dynamic row gather stays in plain JAX)
    positions = jnp.arange(S, dtype=jnp.int32)
    emb = (params["word_emb"][input_ids]
           + params["pos_emb"][positions][None, :, :]
           + params["type_emb"][0][None, None, :])            # (B, S, H)
    emb2d = emb.reshape(B * S, H).astype(jnp.float32)

    # additive attention mask, precomputed once (hoisted out of the kernel)
    neg_mask = ((1.0 - attention_mask.astype(jnp.float32)) * (-1e9)).reshape(B, 1, S)

    logits = fused_forward_call(emb2d, neg_mask, params)       # (B, 5)
    return {"logits": logits}


# ----------------------- main ------------------------------------------------
if __name__ == "__main__":
    key = jax.random.PRNGKey(0)
    pkey, ikey = jax.random.split(key)
    params = init_params(pkey)

    # input_ids: CLS token (id 0) at position 0, random tokens elsewhere
    input_ids = jax.random.randint(ikey, (B, S), 1, VOCAB, dtype=jnp.int32)
    input_ids = input_ids.at[:, 0].set(0)
    # attention_mask: second sequence padded at the last 3 positions
    attention_mask = jnp.ones((B, S), jnp.int32)
    attention_mask = attention_mask.at[1, S - 3:].set(0)

    out = forward(params, input_ids, attention_mask)
    logits = jax.block_until_ready(out["logits"])
    assert logits.shape == (B, NUM_OUT)
    assert logits.dtype == jnp.float32
    assert bool(jnp.all(jnp.isfinite(logits)))
    print("KERNEL_OK")
</pallas_src>

<mosaic_0001>
module attributes {stable_mosaic.version = 11 : i64} {
  func.func @fused_kernel(%arg0: i32, %arg1: memref<16x128xf32, #tpu.memory_space<vmem>>, %arg2: memref<2x1x8xf32, #tpu.memory_space<vmem>>, %arg3: memref<1x128xf32, #tpu.memory_space<vmem>>, %arg4: memref<1x128xf32, #tpu.memory_space<vmem>>, %arg5: memref<1x128x384xf32, #tpu.memory_space<vmem>>, %arg6: memref<1x1x384xf32, #tpu.memory_space<vmem>>, %arg7: memref<1x128x128xf32, #tpu.memory_space<vmem>>, %arg8: memref<1x1x128xf32, #tpu.memory_space<vmem>>, %arg9: memref<1x1x128xf32, #tpu.memory_space<vmem>>, %arg10: memref<1x1x128xf32, #tpu.memory_space<vmem>>, %arg11: memref<1x128x512xf32, #tpu.memory_space<vmem>>, %arg12: memref<1x1x512xf32, #tpu.memory_space<vmem>>, %arg13: memref<1x512x128xf32, #tpu.memory_space<vmem>>, %arg14: memref<1x1x128xf32, #tpu.memory_space<vmem>>, %arg15: memref<1x1x128xf32, #tpu.memory_space<vmem>>, %arg16: memref<1x1x128xf32, #tpu.memory_space<vmem>>, %arg17: memref<128x5xf32, #tpu.memory_space<vmem>>, %arg18: memref<1x5xf32, #tpu.memory_space<vmem>>, %arg19: memref<2x5xf32, #tpu.memory_space<vmem>>, %arg20: memref<16x128xf32, #tpu.memory_space<vmem>>) attributes {dimension_semantics = [#tpu.dimension_semantics<arbitrary>], iteration_bounds = array<i64: 2>, scalar_prefetch = 0 : i64, scratch_operands = 1 : i64, tpu.core_type = #tpu.core_type<tc>, window_params = [{pipeline_mode = #tpu.pipeline_mode<synchronous>, transform_indices = @transform_0, window_bounds = array<i64: 16, 128>}, {pipeline_mode = #tpu.pipeline_mode<synchronous>, transform_indices = @transform_1, window_bounds = array<i64: 2, 1, 8>}, {pipeline_mode = #tpu.pipeline_mode<synchronous>, transform_indices = @transform_2, window_bounds = array<i64: 1, 128>}, {pipeline_mode = #tpu.pipeline_mode<synchronous>, transform_indices = @transform_3, window_bounds = array<i64: 1, 128>}, {transform_indices = @transform_4, window_bounds = array<i64: 1, 128, 384>}, {transform_indices = @transform_5, window_bounds = array<i64: 1, 1, 384>}, {transform_indices = @transform_6, window_bounds = array<i64: 1, 128, 128>}, {transform_indices = @transform_7, window_bounds = array<i64: 1, 1, 128>}, {transform_indices = @transform_8, window_bounds = array<i64: 1, 1, 128>}, {transform_indices = @transform_9, window_bounds = array<i64: 1, 1, 128>}, {transform_indices = @transform_10, window_bounds = array<i64: 1, 128, 512>}, {transform_indices = @transform_11, window_bounds = array<i64: 1, 1, 512>}, {transform_indices = @transform_12, window_bounds = array<i64: 1, 512, 128>}, {transform_indices = @transform_13, window_bounds = array<i64: 1, 1, 128>}, {transform_indices = @transform_14, window_bounds = array<i64: 1, 1, 128>}, {transform_indices = @transform_15, window_bounds = array<i64: 1, 1, 128>}, {pipeline_mode = #tpu.pipeline_mode<synchronous>, transform_indices = @transform_16, window_bounds = array<i64: 128, 5>}, {pipeline_mode = #tpu.pipeline_mode<synchronous>, transform_indices = @transform_17, window_bounds = array<i64: 1, 5>}, {pipeline_mode = #tpu.pipeline_mode<synchronous>, transform_indices = @transform_18, window_bounds = array<i64: 2, 5>}]} {
    %c0_i32 = arith.constant 0 : i32
    %0 = arith.cmpi eq, %arg0, %c0_i32 : i32
    %1 = arith.extui %0 : i1 to i32
    %c0_i32_0 = arith.constant 0 : i32
    %2 = arith.cmpi ne, %1, %c0_i32_0 : i32
    scf.if %2 {
      %c0_66 = arith.constant 0 : index
      %c0_67 = arith.constant 0 : index
      %140 = vector.load %arg1[%c0_66, %c0_67] : memref<16x128xf32, #tpu.memory_space<vmem>>, vector<16x128xf32>
      %c0_68 = arith.constant 0 : index
      %c0_69 = arith.constant 0 : index
      %141 = vector.load %arg3[%c0_68, %c0_69] : memref<1x128xf32, #tpu.memory_space<vmem>>, vector<1x128xf32>
      %c0_70 = arith.constant 0 : index
      %c0_71 = arith.constant 0 : index
      %142 = vector.load %arg4[%c0_70, %c0_71] : memref<1x128xf32, #tpu.memory_space<vmem>>, vector<1x128xf32>
      %cst_72 = arith.constant dense<0.000000e+00> : vector<16xf32>
      %143 = vector.multi_reduction <add>, %140, %cst_72 [1] : vector<16x128xf32> to vector<16xf32>
      %144 = vector.shape_cast %143 : vector<16xf32> to vector<16x1xf32>
      %cst_73 = arith.constant 1.280000e+02 : f32
      %145 = vector.broadcast %cst_73 : f32 to vector<16x1xf32>
      %146 = arith.divf %144, %145 : vector<16x1xf32>
      %147 = vector.broadcast %146 : vector<16x1xf32> to vector<16x128xf32>
      %148 = arith.subf %140, %147 : vector<16x128xf32>
      %149 = arith.mulf %148, %148 : vector<16x128xf32>
      %cst_74 = arith.constant dense<0.000000e+00> : vector<16xf32>
      %150 = vector.multi_reduction <add>, %149, %cst_74 [1] : vector<16x128xf32> to vector<16xf32>
      %151 = vector.shape_cast %150 : vector<16xf32> to vector<16x1xf32>
      %cst_75 = arith.constant 1.280000e+02 : f32
      %152 = vector.broadcast %cst_75 : f32 to vector<16x1xf32>
      %153 = arith.divf %151, %152 : vector<16x1xf32>
      %154 = vector.broadcast %146 : vector<16x1xf32> to vector<16x128xf32>
      %155 = arith.subf %140, %154 : vector<16x128xf32>
      %cst_76 = arith.constant 9.99999974E-6 : f32
      %156 = vector.broadcast %cst_76 : f32 to vector<16x1xf32>
      %157 = arith.addf %153, %156 : vector<16x1xf32>
      %158 = math.rsqrt %157 : vector<16x1xf32>
      %159 = vector.broadcast %158 : vector<16x1xf32> to vector<16x128xf32>
      %160 = arith.mulf %155, %159 : vector<16x128xf32>
      %161 = vector.broadcast %141 : vector<1x128xf32> to vector<16x128xf32>
      %162 = arith.mulf %160, %161 : vector<16x128xf32>
      %163 = vector.broadcast %142 : vector<1x128xf32> to vector<16x128xf32>
      %164 = arith.addf %162, %163 : vector<16x128xf32>
      %c0_77 = arith.constant 0 : index
      %c0_78 = arith.constant 0 : index
      %165 = vector.load %arg20[%c0_77, %c0_78] : memref<16x128xf32, #tpu.memory_space<vmem>>, vector<16x128xf32>
      tpu.vector_store %arg20[%c0_77, %c0_78], %164 {strides = array<i32>} : memref<16x128xf32, #tpu.memory_space<vmem>>, vector<16x128xf32>,
    } else {
    }
    %c0 = arith.constant 0 : index
    %c0_1 = arith.constant 0 : index
    %3 = vector.load %arg20[%c0, %c0_1] : memref<16x128xf32, #tpu.memory_space<vmem>>, vector<16x128xf32>
    %c0_2 = arith.constant 0 : index
    %c0_3 = arith.constant 0 : index
    %c0_4 = arith.constant 0 : index
    %4 = vector.load %arg5[%c0_2, %c0_3, %c0_4] : memref<1x128x384xf32, #tpu.memory_space<vmem>>, vector<1x128x384xf32>
    %5 = vector.shape_cast %4 : vector<1x128x384xf32> to vector<128x384xf32>
    %cst = arith.constant dense<0.000000e+00> : vector<16x384xf32>
    %6 = tpu.matmul %3, %5, %cst {dimension_numbers = #tpu.dot_dimension_numbers<[1], [0], [0], [1], [0, 0, 1, 1], [], []>} : vector<16x128xf32>, vector<128x384xf32>, vector<16x384xf32> -> vector<16x384xf32>
    %c0_5 = arith.constant 0 : index
    %c0_6 = arith.constant 0 : index
    %c0_7 = arith.constant 0 : index
    %7 = vector.load %arg6[%c0_5, %c0_6, %c0_7] : memref<1x1x384xf32, #tpu.memory_space<vmem>>, vector<1x1x384xf32>
    %8 = vector.shape_cast %7 : vector<1x1x384xf32> to vector<1x384xf32>
    %9 = vector.broadcast %8 : vector<1x384xf32> to vector<16x384xf32>
    %10 = arith.addf %6, %9 : vector<16x384xf32>
    %11 = vector.extract_strided_slice %10 {offsets = [0, 0], sizes = [16, 128], strides = [1, 1]} : vector<16x384xf32> to vector<16x128xf32>
    %cst_8 = arith.constant 1.250000e-01 : f32
    %12 = vector.broadcast %cst_8 : f32 to vector<16x128xf32>
    %13 = arith.mulf %11, %12 : vector<16x128xf32>
    %14 = vector.extract_strided_slice %10 {offsets = [0, 128], sizes = [16, 128], strides = [1, 1]} : vector<16x384xf32> to vector<16x128xf32>
    %15 = vector.extract_strided_slice %10 {offsets = [0, 256], sizes = [16, 128], strides = [1, 1]} : vector<16x384xf32> to vector<16x128xf32>
    %16 = vector.shape_cast %13 : vector<16x128xf32> to vector<2x8x128xf32>
    %17 = vector.extract_strided_slice %16 {offsets = [0, 0, 0], sizes = [2, 8, 64], strides = [1, 1, 1]} : vector<2x8x128xf32> to vector<2x8x64xf32>
    %18 = vector.extract_strided_slice %16 {offsets = [0, 0, 64], sizes = [2, 8, 64], strides = [1, 1, 1]} : vector<2x8x128xf32> to vector<2x8x64xf32>
    %19 = tpu.concatenate %17, %18 in 0 : vector<2x8x64xf32>, vector<2x8x64xf32> -> vector<4x8x64xf32>
    %20 = vector.shape_cast %14 : vector<16x128xf32> to vector<2x8x128xf32>
    %21 = vector.extract_strided_slice %20 {offsets = [0, 0, 0], sizes = [2, 8, 64], strides = [1, 1, 1]} : vector<2x8x128xf32> to vector<2x8x64xf32>
    %22 = vector.extract_strided_slice %20 {offsets = [0, 0, 64], sizes = [2, 8, 64], strides = [1, 1, 1]} : vector<2x8x128xf32> to vector<2x8x64xf32>
    %23 = tpu.concatenate %21, %22 in 0 : vector<2x8x64xf32>, vector<2x8x64xf32> -> vector<4x8x64xf32>
    %24 = vector.shape_cast %15 : vector<16x128xf32> to vector<2x8x128xf32>
    %25 = vector.extract_strided_slice %24 {offsets = [0, 0, 0], sizes = [2, 8, 64], strides = [1, 1, 1]} : vector<2x8x128xf32> to vector<2x8x64xf32>
    %26 = vector.extract_strided_slice %24 {offsets = [0, 0, 64], sizes = [2, 8, 64], strides = [1, 1, 1]} : vector<2x8x128xf32> to vector<2x8x64xf32>
    %27 = tpu.concatenate %25, %26 in 0 : vector<2x8x64xf32>, vector<2x8x64xf32> -> vector<4x8x64xf32>
    %c0_9 = arith.constant 0 : index
    %c0_10 = arith.constant 0 : index
    %c0_11 = arith.constant 0 : index
    %28 = vector.load %arg2[%c0_9, %c0_10, %c0_11] : memref<2x1x8xf32, #tpu.memory_space<vmem>>, vector<2x1x8xf32>
    %29 = tpu.concatenate %28, %28 in 0 : vector<2x1x8xf32>, vector<2x1x8xf32> -> vector<4x1x8xf32>
    "tpu.trace_start"() <{level = 10 : i32, message = "bqd,bkd->bqk"}> : () -> ()
    %cst_12 = arith.constant dense<0.000000e+00> : vector<4x8x8xf32>
    %30 = tpu.matmul %19, %23, %cst_12 {dimension_numbers = #tpu.dot_dimension_numbers<[2], [2], [1], [1], [0, 0, 0, 1, 1, 1], [0], [0]>} : vector<4x8x64xf32>, vector<4x8x64xf32>, vector<4x8x8xf32> -> vector<4x8x8xf32>
    "tpu.trace_stop"() : () -> ()
    %31 = vector.broadcast %29 : vector<4x1x8xf32> to vector<4x8x8xf32>
    %32 = arith.addf %30, %31 : vector<4x8x8xf32>
    %cst_13 = arith.constant dense<0xFF800000> : vector<4x8xf32>
    %33 = vector.multi_reduction <maximumf>, %32, %cst_13 [2] : vector<4x8x8xf32> to vector<4x8xf32>
    %34 = vector.shape_cast %33 : vector<4x8xf32> to vector<4x8x1xf32>
    %35 = vector.broadcast %34 : vector<4x8x1xf32> to vector<4x8x8xf32>
    %36 = arith.subf %32, %35 : vector<4x8x8xf32>
    %37 = math.exp %36 : vector<4x8x8xf32>
    %cst_14 = arith.constant dense<0.000000e+00> : vector<4x8xf32>
    %38 = vector.multi_reduction <add>, %37, %cst_14 [2] : vector<4x8x8xf32> to vector<4x8xf32>
    %39 = vector.shape_cast %38 : vector<4x8xf32> to vector<4x8x1xf32>
    %40 = tpu.reciprocal %39 {approx = true} : vector<4x8x1xf32> -> vector<4x8x1xf32>
    %41 = vector.broadcast %40 : vector<4x8x1xf32> to vector<4x8x8xf32>
    %42 = arith.mulf %37, %41 : vector<4x8x8xf32>
    "tpu.trace_start"() <{level = 10 : i32, message = "bqk,bkd->bqd"}> : () -> ()
    %cst_15 = arith.constant dense<0.000000e+00> : vector<4x8x64xf32>
    %43 = tpu.matmul %42, %27, %cst_15 {dimension_numbers = #tpu.dot_dimension_numbers<[2], [1], [1], [2], [0, 0, 0, 1, 1, 2], [0], [0]>} : vector<4x8x8xf32>, vector<4x8x64xf32>, vector<4x8x64xf32> -> vector<4x8x64xf32>
    "tpu.trace_stop"() : () -> ()
    %44 = vector.extract_strided_slice %43 {offsets = [0, 0, 0], sizes = [2, 8, 64], strides = [1, 1, 1]} : vector<4x8x64xf32> to vector<2x8x64xf32>
    %45 = vector.extract_strided_slice %43 {offsets = [2, 0, 0], sizes = [2, 8, 64], strides = [1, 1, 1]} : vector<4x8x64xf32> to vector<2x8x64xf32>
    %46 = tpu.concatenate %44, %45 in 2 : vector<2x8x64xf32>, vector<2x8x64xf32> -> vector<2x8x128xf32>
    %47 = vector.shape_cast %46 : vector<2x8x128xf32> to vector<16x128xf32>
    %c0_16 = arith.constant 0 : index
    %c0_17 = arith.constant 0 : index
    %c0_18 = arith.constant 0 : index
    %48 = vector.load %arg7[%c0_16, %c0_17, %c0_18] : memref<1x128x128xf32, #tpu.memory_space<vmem>>, vector<1x128x128xf32>
    %49 = vector.shape_cast %48 : vector<1x128x128xf32> to vector<128x128xf32>
    %cst_19 = arith.constant dense<0.000000e+00> : vector<16x128xf32>
    %50 = tpu.matmul %47, %49, %cst_19 {dimension_numbers = #tpu.dot_dimension_numbers<[1], [0], [0], [1], [0, 0, 1, 1], [], []>} : vector<16x128xf32>, vector<128x128xf32>, vector<16x128xf32> -> vector<16x128xf32>
    %c0_20 = arith.constant 0 : index
    %c0_21 = arith.constant 0 : index
    %c0_22 = arith.constant 0 : index
    %51 = vector.load %arg8[%c0_20, %c0_21, %c0_22] : memref<1x1x128xf32, #tpu.memory_space<vmem>>, vector<1x1x128xf32>
    %52 = vector.shape_cast %51 : vector<1x1x128xf32> to vector<1x128xf32>
    %53 = vector.broadcast %52 : vector<1x128xf32> to vector<16x128xf32>
    %54 = arith.addf %50, %53 : vector<16x128xf32>
    %55 = arith.addf %3, %54 : vector<16x128xf32>
    %c0_23 = arith.constant 0 : index
    %c0_24 = arith.constant 0 : index
    %c0_25 = arith.constant 0 : index
    %56 = vector.load %arg9[%c0_23, %c0_24, %c0_25] : memref<1x1x128xf32, #tpu.memory_space<vmem>>, vector<1x1x128xf32>
    %57 = vector.shape_cast %56 : vector<1x1x128xf32> to vector<1x128xf32>
    %c0_26 = arith.constant 0 : index
    %c0_27 = arith.constant 0 : index
    %c0_28 = arith.constant 0 : index
    %58 = vector.load %arg10[%c0_26, %c0_27, %c0_28] : memref<1x1x128xf32, #tpu.memory_space<vmem>>, vector<1x1x128xf32>
    %59 = vector.shape_cast %58 : vector<1x1x128xf32> to vector<1x128xf32>
    %cst_29 = arith.constant dense<0.000000e+00> : vector<16xf32>
    %60 = vector.multi_reduction <add>, %55, %cst_29 [1] : vector<16x128xf32> to vector<16xf32>
    %61 = vector.shape_cast %60 : vector<16xf32> to vector<16x1xf32>
    %cst_30 = arith.constant 1.280000e+02 : f32
    %62 = vector.broadcast %cst_30 : f32 to vector<16x1xf32>
    %63 = arith.divf %61, %62 : vector<16x1xf32>
    %64 = vector.broadcast %63 : vector<16x1xf32> to vector<16x128xf32>
    %65 = arith.subf %55, %64 : vector<16x128xf32>
    %66 = arith.mulf %65, %65 : vector<16x128xf32>
    %cst_31 = arith.constant dense<0.000000e+00> : vector<16xf32>
    %67 = vector.multi_reduction <add>, %66, %cst_31 [1] : vector<16x128xf32> to vector<16xf32>
    %68 = vector.shape_cast %67 : vector<16xf32> to vector<16x1xf32>
    %cst_32 = arith.constant 1.280000e+02 : f32
    %69 = vector.broadcast %cst_32 : f32 to vector<16x1xf32>
    %70 = arith.divf %68, %69 : vector<16x1xf32>
    %71 = vector.broadcast %63 : vector<16x1xf32> to vector<16x128xf32>
    %72 = arith.subf %55, %71 : vector<16x128xf32>
    %cst_33 = arith.constant 9.99999974E-6 : f32
    %73 = vector.broadcast %cst_33 : f32 to vector<16x1xf32>
    %74 = arith.addf %70, %73 : vector<16x1xf32>
    %75 = math.rsqrt %74 : vector<16x1xf32>
    %76 = vector.broadcast %75 : vector<16x1xf32> to vector<16x128xf32>
    %77 = arith.mulf %72, %76 : vector<16x128xf32>
    %78 = vector.broadcast %57 : vector<1x128xf32> to vector<16x128xf32>
    %79 = arith.mulf %77, %78 : vector<16x128xf32>
    %80 = vector.broadcast %59 : vector<1x128xf32> to vector<16x128xf32>
    %81 = arith.addf %79, %80 : vector<16x128xf32>
    %c0_34 = arith.constant 0 : index
    %c0_35 = arith.constant 0 : index
    %c0_36 = arith.constant 0 : index
    %82 = vector.load %arg11[%c0_34, %c0_35, %c0_36] : memref<1x128x512xf32, #tpu.memory_space<vmem>>, vector<1x128x512xf32>
    %83 = vector.shape_cast %82 : vector<1x128x512xf32> to vector<128x512xf32>
    %cst_37 = arith.constant dense<0.000000e+00> : vector<16x512xf32>
    %84 = tpu.matmul %81, %83, %cst_37 {dimension_numbers = #tpu.dot_dimension_numbers<[1], [0], [0], [1], [0, 0, 1, 1], [], []>} : vector<16x128xf32>, vector<128x512xf32>, vector<16x512xf32> -> vector<16x512xf32>
    %c0_38 = arith.constant 0 : index
    %c0_39 = arith.constant 0 : index
    %c0_40 = arith.constant 0 : index
    %85 = vector.load %arg12[%c0_38, %c0_39, %c0_40] : memref<1x1x512xf32, #tpu.memory_space<vmem>>, vector<1x1x512xf32>
    %86 = vector.shape_cast %85 : vector<1x1x512xf32> to vector<1x512xf32>
    %87 = vector.broadcast %86 : vector<1x512xf32> to vector<16x512xf32>
    %88 = arith.addf %84, %87 : vector<16x512xf32>
    %89 = arith.mulf %88, %88 : vector<16x512xf32>
    %90 = arith.mulf %88, %89 : vector<16x512xf32>
    %cst_41 = arith.constant 4.471500e-02 : f32
    %91 = vector.broadcast %cst_41 : f32 to vector<16x512xf32>
    %92 = arith.mulf %91, %90 : vector<16x512xf32>
    %93 = arith.addf %88, %92 : vector<16x512xf32>
    %cst_42 = arith.constant 0.797884583 : f32
    %94 = vector.broadcast %cst_42 : f32 to vector<16x512xf32>
    %95 = arith.mulf %94, %93 : vector<16x512xf32>
    %96 = math.tanh %95 : vector<16x512xf32>
    %cst_43 = arith.constant 1.000000e+00 : f32
    %97 = vector.broadcast %cst_43 : f32 to vector<16x512xf32>
    %98 = arith.addf %97, %96 : vector<16x512xf32>
    %cst_44 = arith.constant 5.000000e-01 : f32
    %99 = vector.broadcast %cst_44 : f32 to vector<16x512xf32>
    %100 = arith.mulf %99, %98 : vector<16x512xf32>
    %101 = arith.mulf %88, %100 : vector<16x512xf32>
    %c0_45 = arith.constant 0 : index
    %c0_46 = arith.constant 0 : index
    %c0_47 = arith.constant 0 : index
    %102 = vector.load %arg13[%c0_45, %c0_46, %c0_47] : memref<1x512x128xf32, #tpu.memory_space<vmem>>, vector<1x512x128xf32>
    %103 = vector.shape_cast %102 : vector<1x512x128xf32> to vector<512x128xf32>
    %cst_48 = arith.constant dense<0.000000e+00> : vector<16x128xf32>
    %104 = tpu.matmul %101, %103, %cst_48 {dimension_numbers = #tpu.dot_dimension_numbers<[1], [0], [0], [1], [0, 0, 1, 1], [], []>} : vector<16x512xf32>, vector<512x128xf32>, vector<16x128xf32> -> vector<16x128xf32>
    %c0_49 = arith.constant 0 : index
    %c0_50 = arith.constant 0 : index
    %c0_51 = arith.constant 0 : index
    %105 = vector.load %arg14[%c0_49, %c0_50, %c0_51] : memref<1x1x128xf32, #tpu.memory_space<vmem>>, vector<1x1x128xf32>
    %106 = vector.shape_cast %105 : vector<1x1x128xf32> to vector<1x128xf32>
    %107 = vector.broadcast %106 : vector<1x128xf32> to vector<16x128xf32>
    %108 = arith.addf %104, %107 : vector<16x128xf32>
    %109 = arith.addf %81, %108 : vector<16x128xf32>
    %c0_52 = arith.constant 0 : index
    %c0_53 = arith.constant 0 : index
    %c0_54 = arith.constant 0 : index
    %110 = vector.load %arg15[%c0_52, %c0_53, %c0_54] : memref<1x1x128xf32, #tpu.memory_space<vmem>>, vector<1x1x128xf32>
    %111 = vector.shape_cast %110 : vector<1x1x128xf32> to vector<1x128xf32>
    %c0_55 = arith.constant 0 : index
    %c0_56 = arith.constant 0 : index
    %c0_57 = arith.constant 0 : index
    %112 = vector.load %arg16[%c0_55, %c0_56, %c0_57] : memref<1x1x128xf32, #tpu.memory_space<vmem>>, vector<1x1x128xf32>
    %113 = vector.shape_cast %112 : vector<1x1x128xf32> to vector<1x128xf32>
    %cst_58 = arith.constant dense<0.000000e+00> : vector<16xf32>
    %114 = vector.multi_reduction <add>, %109, %cst_58 [1] : vector<16x128xf32> to vector<16xf32>
    %115 = vector.shape_cast %114 : vector<16xf32> to vector<16x1xf32>
    %cst_59 = arith.constant 1.280000e+02 : f32
    %116 = vector.broadcast %cst_59 : f32 to vector<16x1xf32>
    %117 = arith.divf %115, %116 : vector<16x1xf32>
    %118 = vector.broadcast %117 : vector<16x1xf32> to vector<16x128xf32>
    %119 = arith.subf %109, %118 : vector<16x128xf32>
    %120 = arith.mulf %119, %119 : vector<16x128xf32>
    %cst_60 = arith.constant dense<0.000000e+00> : vector<16xf32>
    %121 = vector.multi_reduction <add>, %120, %cst_60 [1] : vector<16x128xf32> to vector<16xf32>
    %122 = vector.shape_cast %121 : vector<16xf32> to vector<16x1xf32>
    %cst_61 = arith.constant 1.280000e+02 : f32
    %123 = vector.broadcast %cst_61 : f32 to vector<16x1xf32>
    %124 = arith.divf %122, %123 : vector<16x1xf32>
    %125 = vector.broadcast %117 : vector<16x1xf32> to vector<16x128xf32>
    %126 = arith.subf %109, %125 : vector<16x128xf32>
    %cst_62 = arith.constant 9.99999974E-6 : f32
    %127 = vector.broadcast %cst_62 : f32 to vector<16x1xf32>
    %128 = arith.addf %124, %127 : vector<16x1xf32>
    %129 = math.rsqrt %128 : vector<16x1xf32>
    %130 = vector.broadcast %129 : vector<16x1xf32> to vector<16x128xf32>
    %131 = arith.mulf %126, %130 : vector<16x128xf32>
    %132 = vector.broadcast %111 : vector<1x128xf32> to vector<16x128xf32>
    %133 = arith.mulf %131, %132 : vector<16x128xf32>
    %134 = vector.broadcast %113 : vector<1x128xf32> to vector<16x128xf32>
    %135 = arith.addf %133, %134 : vector<16x128xf32>
    %c0_63 = arith.constant 0 : index
    %c0_64 = arith.constant 0 : index
    %136 = vector.load %arg20[%c0_63, %c0_64] : memref<16x128xf32, #tpu.memory_space<vmem>>, vector<16x128xf32>
    tpu.vector_store %arg20[%c0_63, %c0_64], %135 {strides = array<i32>} : memref<16x128xf32, #tpu.memory_space<vmem>>, vector<16x128xf32>,
    %c1_i32 = arith.constant 1 : i32
    %137 = arith.cmpi eq, %arg0, %c1_i32 : i32
    %138 = arith.extui %137 : i1 to i32
    %c0_i32_65 = arith.constant 0 : i32
    %139 = arith.cmpi ne, %138, %c0_i32_65 : i32
    scf.if %139 {
      %140 = vector.shape_cast %135 : vector<16x128xf32> to vector<2x8x128xf32>
      %141 = vector.extract_strided_slice %140 {offsets = [0, 0, 0], sizes = [2, 1, 128], strides = [1, 1, 1]} : vector<2x8x128xf32> to vector<2x1x128xf32>
      %142 = vector.shape_cast %141 : vector<2x1x128xf32> to vector<2x128xf32>
      %c0_66 = arith.constant 0 : index
      %c0_67 = arith.constant 0 : index
      %143 = vector.load %arg17[%c0_66, %c0_67] : memref<128x5xf32, #tpu.memory_space<vmem>>, vector<128x5xf32>
      %cst_68 = arith.constant dense<0.000000e+00> : vector<2x5xf32>
      %144 = tpu.matmul %142, %143, %cst_68 {dimension_numbers = #tpu.dot_dimension_numbers<[1], [0], [0], [1], [0, 0, 1, 1], [], []>} : vector<2x128xf32>, vector<128x5xf32>, vector<2x5xf32> -> vector<2x5xf32>
      %c0_69 = arith.constant 0 : index
      %c0_70 = arith.constant 0 : index
      %145 = vector.load %arg18[%c0_69, %c0_70] : memref<1x5xf32, #tpu.memory_space<vmem>>, vector<1x5xf32>
      %146 = vector.broadcast %145 : vector<1x5xf32> to vector<2x5xf32>
      %147 = arith.addf %144, %146 : vector<2x5xf32>
      %c0_71 = arith.constant 0 : index
      %c0_72 = arith.constant 0 : index
      %148 = vector.load %arg19[%c0_71, %c0_72] : memref<2x5xf32, #tpu.memory_space<vmem>>, vector<2x5xf32>
      tpu.vector_store %arg19[%c0_71, %c0_72], %147 {strides = array<i32>} : memref<2x5xf32, #tpu.memory_space<vmem>>, vector<2x5xf32>,
    } else {
    }
    return
  }
  func.func @transform_0(%arg0: i32) -> (i32, i32) {
    %c0_i32 = arith.constant 0 : i32
    %c0_i32_0 = arith.constant 0 : i32
    %c0_i32_1 = arith.constant 0 : i32
    return %c0_i32, %c0_i32_0 : i32, i32
  }
  func.func @transform_1(%arg0: i32) -> (i32, i32, i32) {
    %c0_i32 = arith.constant 0 : i32
    %c0_i32_0 = arith.constant 0 : i32
    %c0_i32_1 = arith.constant 0 : i32
    %c0_i32_2 = arith.constant 0 : i32
    return %c0_i32, %c0_i32_0, %c0_i32_1 : i32, i32, i32
  }
  func.func @transform_2(%arg0: i32) -> (i32, i32) {
    %c0_i32 = arith.constant 0 : i32
    %c0_i32_0 = arith.constant 0 : i32
    %c0_i32_1 = arith.constant 0 : i32
    return %c0_i32, %c0_i32_0 : i32, i32
  }
  func.func @transform_3(%arg0: i32) -> (i32, i32) {
    %c0_i32 = arith.constant 0 : i32
    %c0_i32_0 = arith.constant 0 : i32
    %c0_i32_1 = arith.constant 0 : i32
    return %c0_i32, %c0_i32_0 : i32, i32
  }
  func.func @transform_4(%arg0: i32) -> (i32, i32, i32) {
    %c0_i32 = arith.constant 0 : i32
    %c0_i32_0 = arith.constant 0 : i32
    %c0_i32_1 = arith.constant 0 : i32
    return %arg0, %c0_i32, %c0_i32_0 : i32, i32, i32
  }
  func.func @transform_5(%arg0: i32) -> (i32, i32, i32) {
    %c0_i32 = arith.constant 0 : i32
    %c0_i32_0 = arith.constant 0 : i32
    %c0_i32_1 = arith.constant 0 : i32
    return %arg0, %c0_i32, %c0_i32_0 : i32, i32, i32
  }
  func.func @transform_6(%arg0: i32) -> (i32, i32, i32) {
    %c0_i32 = arith.constant 0 : i32
    %c0_i32_0 = arith.constant 0 : i32
    %c0_i32_1 = arith.constant 0 : i32
    return %arg0, %c0_i32, %c0_i32_0 : i32, i32, i32
  }
  func.func @transform_7(%arg0: i32) -> (i32, i32, i32) {
    %c0_i32 = arith.constant 0 : i32
    %c0_i32_0 = arith.constant 0 : i32
    %c0_i32_1 = arith.constant 0 : i32
    return %arg0, %c0_i32, %c0_i32_0 : i32, i32, i32
  }
  func.func @transform_8(%arg0: i32) -> (i32, i32, i32) {
    %c0_i32 = arith.constant 0 : i32
    %c0_i32_0 = arith.constant 0 : i32
    %c0_i32_1 = arith.constant 0 : i32
    return %arg0, %c0_i32, %c0_i32_0 : i32, i32, i32
  }
  func.func @transform_9(%arg0: i32) -> (i32, i32, i32) {
    %c0_i32 = arith.constant 0 : i32
    %c0_i32_0 = arith.constant 0 : i32
    %c0_i32_1 = arith.constant 0 : i32
    return %arg0, %c0_i32, %c0_i32_0 : i32, i32, i32
  }
  func.func @transform_10(%arg0: i32) -> (i32, i32, i32) {
    %c0_i32 = arith.constant 0 : i32
    %c0_i32_0 = arith.constant 0 : i32
    %c0_i32_1 = arith.constant 0 : i32
    return %arg0, %c0_i32, %c0_i32_0 : i32, i32, i32
  }
  func.func @transform_11(%arg0: i32) -> (i32, i32, i32) {
    %c0_i32 = arith.constant 0 : i32
    %c0_i32_0 = arith.constant 0 : i32
    %c0_i32_1 = arith.constant 0 : i32
    return %arg0, %c0_i32, %c0_i32_0 : i32, i32, i32
  }
  func.func @transform_12(%arg0: i32) -> (i32, i32, i32) {
    %c0_i32 = arith.constant 0 : i32
    %c0_i32_0 = arith.constant 0 : i32
    %c0_i32_1 = arith.constant 0 : i32
    return %arg0, %c0_i32, %c0_i32_0 : i32, i32, i32
  }
  func.func @transform_13(%arg0: i32) -> (i32, i32, i32) {
    %c0_i32 = arith.constant 0 : i32
    %c0_i32_0 = arith.constant 0 : i32
    %c0_i32_1 = arith.constant 0 : i32
    return %arg0, %c0_i32, %c0_i32_0 : i32, i32, i32
  }
  func.func @transform_14(%arg0: i32) -> (i32, i32, i32) {
    %c0_i32 = arith.constant 0 : i32
    %c0_i32_0 = arith.constant 0 : i32
    %c0_i32_1 = arith.constant 0 : i32
    return %arg0, %c0_i32, %c0_i32_0 : i32, i32, i32
  }
  func.func @transform_15(%arg0: i32) -> (i32, i32, i32) {
    %c0_i32 = arith.constant 0 : i32
    %c0_i32_0 = arith.constant 0 : i32
    %c0_i32_1 = arith.constant 0 : i32
    return %arg0, %c0_i32, %c0_i32_0 : i32, i32, i32
  }
  func.func @transform_16(%arg0: i32) -> (i32, i32) {
    %c0_i32 = arith.constant 0 : i32
    %c0_i32_0 = arith.constant 0 : i32
    %c0_i32_1 = arith.constant 0 : i32
    return %c0_i32, %c0_i32_0 : i32, i32
  }
  func.func @transform_17(%arg0: i32) -> (i32, i32) {
    %c0_i32 = arith.constant 0 : i32
    %c0_i32_0 = arith.constant 0 : i32
    %c0_i32_1 = arith.constant 0 : i32
    return %c0_i32, %c0_i32_0 : i32, i32
  }
  func.func @transform_18(%arg0: i32) -> (i32, i32) {
    %c0_i32 = arith.constant 0 : i32
    %c0_i32_0 = arith.constant 0 : i32
    %c0_i32_1 = arith.constant 0 : i32
    return %c0_i32, %c0_i32_0 : i32, i32
  }
}

</mosaic_0001>

<bundles_post_ra>
// kernel: tpu_custom_call.1
= control target key start
LH: loop header
LB: loop body
LE: loop exit
PB: predicated region body
PF: predicated region fallthrough
CT: control target
= control target key end

     0   :  { %s4574_s0 = inlined_call_operand.vmem [shape: f32[16,128], index: 0, kind: input, shape index: {}]   ;;  %s4575_s1 = inlined_call_operand.vmem [shape: f32[2,1,8], index: 1, kind: input, shape index: {}]   ;;  %s4576_s2 = inlined_call_operand.vmem [shape: f32[1,128], index: 2, kind: input, shape index: {}]   ;;  %s4577_s3 = inlined_call_operand.vmem [shape: f32[1,128], index: 3, kind: input, shape index: {}]   ;;  %s4578_s4 = inlined_call_operand.hbm [shape: f32[2,128,384], index: 4, kind: input, shape index: {}]   ;;  %s4579_s5 = inlined_call_operand.vmem [shape: f32[2,1,384], index: 5, kind: input, shape index: {}]   ;;  %s4580_s6 = inlined_call_operand.hbm [shape: f32[2,128,128], index: 6, kind: input, shape index: {}]   ;;  %s4581_s7 = inlined_call_operand.vmem [shape: f32[2,1,128], index: 7, kind: input, shape index: {}]   ;;  %s4582_s8 = inlined_call_operand.vmem [shape: f32[2,1,128], index: 8, kind: input, shape index: {}]   ;;  %s4583_s9 = inlined_call_operand.vmem [shape: f32[2,1,128], index: 9, kind: input, shape index: {}]   ;;  %s4584_s10 = inlined_call_operand.hbm [shape: f32[2,128,512], index: 10, kind: input, shape index: {}]   ;;  %s4585_s11 = inlined_call_operand.vmem [shape: f32[2,1,512], index: 11, kind: input, shape index: {}]   ;;  %s4586_s12 = inlined_call_operand.hbm [shape: f32[2,512,128], index: 12, kind: input, shape index: {}]   ;;  %s4587_s13 = inlined_call_operand.vmem [shape: f32[2,1,128], index: 13, kind: input, shape index: {}]   ;;  %s4588_s14 = inlined_call_operand.vmem [shape: f32[2,1,128], index: 14, kind: input, shape index: {}]   ;;  %s4589_s15 = inlined_call_operand.vmem [shape: f32[2,1,128], index: 15, kind: input, shape index: {}]   ;;  %s4590_s16 = inlined_call_operand.vmem [shape: f32[128,5], index: 16, kind: input, shape index: {}]   ;;  %s4591_s17 = inlined_call_operand.vmem [shape: f32[1,5], index: 17, kind: input, shape index: {}]   ;;  %s4592_s18 = inlined_call_operand.hbm [shape: f32[2,5], index: 18, kind: output, shape index: {}]  }
   0x1   :  { %4603 = sst [smem:[#allocation19_spill]] %s4574_s0 }
   0x2   :  { %4604 = sst [smem:[#allocation20_spill]] %s4575_s1 }
   0x3   :  { %4605 = sst [smem:[#allocation21_spill]] %s4576_s2 }
   0x4   :  { %4606 = sst [smem:[#allocation22_spill]] %s4577_s3 }
   0x5   :  { %4607 = sst [smem:[#allocation23_spill]] %s4578_s4 }
   0x6   :  { %4608 = sst [smem:[#allocation24_spill]] %s4580_s6 }
   0x7   :  { %4609 = sst [smem:[#allocation25_spill]] %s4584_s10 }
   0x8   :  { %4610 = sst [smem:[#allocation26_spill]] %s4586_s12 }
   0x9   :  { %4611 = sst [smem:[#allocation27_spill]] %s4589_s15 }
   0xa   :  { %4612 = sst [smem:[#allocation28_spill]] %s4590_s16 }
   0xb   :  { %4613 = sst [smem:[#allocation29_spill]] %s4591_s17 }
   0xc   :  { %4614 = sst [smem:[#allocation30_spill]] %s4592_s18 }
   0xd   :  { %23 = vsyncpa [#allocation4], 0 }
   0xe   :  { %25 = vsyncpa [#allocation4 + $0x1], 0 }
   0xf   :  { %26 = vsyncpa [#allocation7], 0 }
  0x10   :  { %28 = vsyncpa [#allocation7 + $0x1], 0 }
  0x11   :  { %29 = vsyncpa [#allocation10], 0 }
  0x12   :  { %31 = vsyncpa [#allocation10 + $0x1], 0 }
  0x13   :  { %32 = vsyncpa [#allocation5], 0  ;;  %s3809_s27 = smov 0   ;;  %s3811_s28 = smov 0  }
  0x14   :  { %s3813_s29 = smov 0   ;;  %s3815_s30 = smov 0  }
  0x15 LB: > { %4615 = sst [smem:[#allocation16_spill]] %s3691_s29  ;;  %s3828_s0 = sadd.s32 4294967295, %s3695_s30   ;;  %s3695_s30 = sphi %s3815_s30, %s4643_s30   ;;  %s3691_s29 = sphi %s3813_s29, %s4645_s29   ;;  %s3687_s28 = sphi %s3811_s28, %s4647_s28   ;;  %s3683_s27 = sphi %s3809_s27, %s4646_s27  }
  0x16   : > { %s3831_s19 = sadd.s32 1, %s3695_s30   ;;  %s129_s20 = sadd.s32 1, %s3691_s29 }
  0x17   : > { %4616 = sst [smem:[#allocation17_spill]] %s3831_s19  ;;  %s126_s1 = ssub.s32 %s3695_s30, %s3831_s19 }
  0x18   : > { %p127_p0 = scmp.eq.s32.totalorder %s126_s1, 0  ;;  %p136_p1 = scmp.ne.s32.totalorder %s3691_s29, %s3687_s28 }
  0x19   : > { %p137_p2 = scmp.eq.s32.totalorder %s3695_s30, 0  ;;  %p142_p3 = scmp.ne.s32.totalorder %s3687_s28, %s3683_s27 }
  0x1a   : > { %s3841_s21 = scalar_select %p127_p0, %s3691_s29, %s129_s20  }
  0x1b   : > { %p138_p4 = por %p137_p2, %p136_p1  ;;  %p143_p5 = scmp.eq.s32.totalorder %s3828_s0, 0 }
  0x1c   : > { %4617 = sst [smem:[#allocation18_spill]] %s3841_s21  ;;  %p3406_p6 = scmp.lt.s32.totalorder %s3695_s30, 2 }
  0x1d   : > { %p3845_p7 = por %p143_p5, %p142_p3  ;;  %s3850_s2 = sand.u32 1, %s3691_s29  }
  0x1e   : > { %p3852_p8 = pnand %p3406_p6, %p138_p4  ;;  %s561_s24 = sand.u32 1, %s3695_s30  }
  0x1f   : > { %s4618_s22 = scalar_select %p3845_p7, 1, 0 }
  0x20   : > { %s2793_s25 = sshll.u32 %s3850_s2, 7  ;;  %s2836_s26 = sshll.u32 %s3695_s30, 11 }
  0x21   : > { %s565_s27 = scalar_lea.vmem [#allocation6], %s2793_s25  ;;  %s4620_s6 = sld [smem:[#allocation24_spill]] }
  0x22   : > { %s572_s1 = sshll.u32 %s565_s27, 4  ;;  %s3866_s29 = scalar_lea.sflag [#allocation7], %s561_s24  ;;  %s3864_s1 = int_to_ptr.vmem [resolvable:$true] %s572_s1 }
  0x23   : > { %p3872_p10 = pneg %p3852_p8 }
  0x27   : > { %s3862_s19 = scalar_lea.hbm %s4620_s6, %s2836_s26  ;;  %s3508_s26 = scalar_lea.hbm %s4620_s6, 4096 }
  0x28   : > { %s3503_s18 = scalar_lea.hbm %s3862_s19, 2048  ;;  %p3509_p13 = scmp.lt.u32.totalorder %s3862_s19, %s4620_s6 }
  0x29   : > { %p3504_p9 = scmp.ne.s32.totalorder %s3862_s19, %s3503_s18  ;;  %p3510_p0 = scmp.lt.u32.totalorder %s3508_s26, %s3503_s18 }
  0x2a   : > { %p3512_p2 = scmp.lt.u32.totalorder %s3503_s18, %s3862_s19 }
  0x2b   : > { %p3506_p11 = pnand %p3872_p10, %p3504_p9  ;;  %p3511_p1 = por %p3510_p0, %p3509_p13 }
  0x2d   : > { %p3507_p12 = pneg %p3506_p11  ;;  %p3513_p3 = por %p3512_p2, %p3511_p1 }
  0x2f   : > { %p3514_p4 = pnand %p3513_p3, %p3507_p12 }
  0x31   : > { %3517 = shalt.err (!%p3514_p4)
}
  0x32   : > { %s3518_s24 = scalar_lea.vmem %s3864_s1, 2048  ;;  %s3697_s21 = smov [#allocation6]  }
  0x33   : > { %p3519_p5 = scmp.ne.s32.totalorder %s3864_s1, %s3518_s24  ;;  %s3523_s25 = sshll.u32 %s3697_s21, 4  ;;  %s3524_s25 = int_to_ptr.vmem [resolvable:$false] %s3523_s25 }
  0x34   : > { %s3525_s27 = scalar_lea.vmem %s3524_s25, 4096  ;;  %p3526_p11 = scmp.lt.s32.totalorder %s3864_s1, %s3524_s25 }
  0x35   : > { %p3521_p6 = pnand %p3519_p5, %p3872_p10  ;;  %p3527_p7 = scmp.lt.s32.totalorder %s3525_s27, %s3518_s24 }
  0x37   : > { %p3522_p9 = pneg %p3521_p6  ;;  %p3528_p13 = por %p3527_p7, %p3526_p11 }
  0x39   : > { %p3529_p0 = pnand %p3528_p13, %p3522_p9 }
  0x3b   : > { %3532 = shalt.err (!%p3529_p0)
}
  0x3c   : > { %s4601_s18 = smov 128   ;;  %s4602_s26 = smov 8  }
  0x3d   : > { %3399 = dma.hbm_to_vmem [thread:$0]  (!%p3852_p8), %s3862_s19, 2048, %s3864_s1, %s3866_s29, %s4601_s18, %s4601_s18, %s4602_s26  }
  0x3e   : > { %p2802_p7 = scmp.ge.s32.totalorder %s3695_s30, 1  ;;  %p665_p12 = scmp.lt.s32.totalorder %s3695_s30, 3 }
  0x3f   : > { %s3377_s20 = smul.u32 384, %s3850_s2  ;;  %s4623_s4 = sld [smem:[#allocation23_spill]] }
  0x40   : > { %p3902_p1 = pnand %p2802_p7, %p665_p12  ;;  %s3378_s21 = smul.u32 6144, %s3695_s30 }
  0x41   : > { %s537_s16 = scalar_lea.vmem [#allocation3], %s3377_s20  ;;  %s534_s19 = scalar_lea.sflag [#allocation4], %s3850_s2 }
  0x42   : > { %s4622_s24 = scalar_select %p3902_p1, 1, 0 }
  0x43   : > { %s544_s3 = sshll.u32 %s537_s16, 4  ;;  %s3912_s3 = int_to_ptr.vmem [resolvable:$true] %s544_s3 }
  0x45   : > { %s3910_s6 = scalar_lea.hbm %s4623_s4, %s3378_s21  ;;  %s3538_s25 = scalar_lea.hbm %s4623_s4, 12288 }
  0x46   : > { %s3533_s1 = scalar_lea.hbm %s3910_s6, 6144  ;;  %p3539_p5 = scmp.lt.u32.totalorder %s3910_s6, %s4623_s4 }
  0x47   : > { %p3534_p2 = scmp.ne.s32.totalorder %s3910_s6, %s3533_s1  ;;  %p3540_p6 = scmp.lt.u32.totalorder %s3538_s25, %s3533_s1 }
  0x48   : > { %p3542_p11 = scmp.lt.u32.totalorder %s3533_s1, %s3910_s6 }
  0x49   : > { %p3536_p3 = pnand %p3534_p2, %p3872_p10  ;;  %p3541_p9 = por %p3540_p6, %p3539_p5 }
  0x4b   : > { %p3537_p4 = pneg %p3536_p3  ;;  %p3543_p13 = por %p3542_p11, %p3541_p9 }
  0x4d   : > { %p3544_p0 = pnand %p3543_p13, %p3537_p4 }
  0x4f   : > { %3547 = shalt.err (!%p3544_p0)
}
  0x50   : > { %s3548_s16 = scalar_lea.vmem %s3912_s3, 6144  ;;  %s3700_s18 = smov [#allocation3]  }
  0x51   : > { %p3549_p7 = scmp.ne.s32.totalorder %s3912_s3, %s3548_s16  ;;  %s3553_s26 = sshll.u32 %s3700_s18, 4  ;;  %s3554_s26 = int_to_ptr.vmem [resolvable:$false] %s3553_s26 }
  0x52   : > { %s3555_s20 = scalar_lea.vmem %s3554_s26, 12288  ;;  %p3556_p3 = scmp.lt.s32.totalorder %s3912_s3, %s3554_s26 }
  0x53   : > { %p3551_p12 = pnand %p3549_p7, %p3872_p10  ;;  %p3557_p1 = scmp.lt.s32.totalorder %s3555_s20, %s3548_s16 }
  0x55   : > { %p3552_p2 = pneg %p3551_p12  ;;  %p3558_p5 = por %p3557_p1, %p3556_p3 }
  0x57   : > { %p3559_p6 = pnand %p3558_p5, %p3552_p2 }
  0x59   : > { %3562 = shalt.err (!%p3559_p6)
}
  0x5a   : > { %s3701_s1 = smov 384   ;;  %s3702_s25 = smov 24  }
  0x5b   : > { %3396 = dma.hbm_to_vmem [thread:$0]  (!%p3852_p8), %s3910_s6, 6144, %s3912_s3, %s534_s19, %s3701_s1, %s3701_s1, %s3702_s25  }
  0x5c   : > { %s2796_s21 = sshll.u32 %s3850_s2, 9  ;;  %s2837_s27 = sshll.u32 %s3695_s30, 13 }
  0x5d   : > { %s4624_s10 = sld [smem:[#allocation25_spill]]  ;;  %s604_s20 = scalar_lea.vmem [#allocation8], %s2796_s21 }
  0x5e   : > { %s611_s4 = sshll.u32 %s604_s20, 4  ;;  %s3949_s4 = int_to_ptr.vmem [resolvable:$true] %s611_s4 }
  0x63   : > { %s3945_s26 = scalar_lea.hbm %s4624_s10, %s2837_s27  ;;  %s3568_s19 = scalar_lea.hbm %s4624_s10, 16384 }
  0x64   : > { %s3563_s15 = scalar_lea.hbm %s3945_s26, 8192  ;;  %p3569_p11 = scmp.lt.u32.totalorder %s3945_s26, %s4624_s10 }
  0x65   : > { %p3564_p1 = scmp.ne.s32.totalorder %s3945_s26, %s3563_s15  ;;  %p3570_p13 = scmp.lt.u32.totalorder %s3568_s19, %s3563_s15 }
  0x66   : > { %p3572_p7 = scmp.lt.u32.totalorder %s3563_s15, %s3945_s26 }
  0x67   : > { %p3566_p4 = pnand %p3564_p1, %p3872_p10  ;;  %p3571_p0 = por %p3570_p13, %p3569_p11 }
  0x69   : > { %p3567_p9 = pneg %p3566_p4  ;;  %p3573_p12 = por %p3572_p7, %p3571_p0 }
  0x6b   : > { %p3574_p2 = pnand %p3573_p12, %p3567_p9 }
  0x6d   : > { %3577 = shalt.err (!%p3574_p2)
}
  0x6e   : > { %s3578_s16 = scalar_lea.vmem %s3949_s4, 8192  ;;  %s3703_s18 = smov [#allocation8]  }
  0x6f   : > { %p3579_p3 = scmp.ne.s32.totalorder %s3949_s4, %s3578_s16  ;;  %s3583_s20 = sshll.u32 %s3703_s18, 4  ;;  %s3584_s20 = int_to_ptr.vmem [resolvable:$false] %s3583_s20 }
  0x70   : > { %s3585_s3 = scalar_lea.vmem %s3584_s20, 16384  ;;  %p3586_p1 = scmp.lt.s32.totalorder %s3949_s4, %s3584_s20 }
  0x71   : > { %p3581_p5 = pnand %p3579_p3, %p3872_p10  ;;  %p3587_p4 = scmp.lt.s32.totalorder %s3585_s3, %s3578_s16 }
  0x73   : > { %p3582_p6 = pneg %p3581_p5  ;;  %p3588_p11 = por %p3587_p4, %p3586_p1 }
  0x75   : > { %p3589_p13 = pnand %p3588_p11, %p3582_p6 }
  0x77   : > { %3592 = shalt.err (!%p3589_p13)
}
  0x78   : > { %s3704_s15 = smov 512   ;;  %s3705_s6 = smov 32  }
  0x79   : > { %3402 = dma.hbm_to_vmem [thread:$0]  (!%p3852_p8), %s3945_s26, 8192, %s3949_s4, %s3866_s29, %s3704_s15, %s3704_s15, %s3705_s6  }
  0x7a   : > { %s4625_s12 = sld [smem:[#allocation26_spill]]  ;;  %s632_s16 = scalar_lea.vmem [#allocation9], %s2796_s21 }
  0x7b   : > { %s639_s18 = sshll.u32 %s632_s16, 4  ;;  %s629_s20 = scalar_lea.sflag [#allocation10], %s3850_s2  ;;  %s3982_s18 = int_to_ptr.vmem [resolvable:$true] %s639_s18 }
  0x80   : > { %s3978_s25 = scalar_lea.hbm %s4625_s12, %s2837_s27  ;;  %s3598_s30 = scalar_lea.hbm %s4625_s12, 16384 }
  0x81   : > { %s3593_s3 = scalar_lea.hbm %s3978_s25, 8192  ;;  %p3599_p12 = scmp.lt.u32.totalorder %s3978_s25, %s4625_s12 }
  0x82   : > { %p3594_p9 = scmp.ne.s32.totalorder %s3978_s25, %s3593_s3  ;;  %p3600_p2 = scmp.lt.u32.totalorder %s3598_s30, %s3593_s3 }
  0x83   : > { %p3602_p5 = scmp.lt.u32.totalorder %s3593_s3, %s3978_s25 }
  0x84   : > { %p3596_p0 = pnand %p3594_p9, %p3872_p10  ;;  %p3601_p3 = por %p3600_p2, %p3599_p12 }
  0x86   : > { %p3597_p7 = pneg %p3596_p0  ;;  %p3603_p6 = por %p3602_p5, %p3601_p3 }
  0x88   : > { %p3604_p1 = pnand %p3603_p6, %p3597_p7 }
  0x8a   : > { %3607 = shalt.err (!%p3604_p1)
}
  0x8b   : > { %s3608_s21 = scalar_lea.vmem %s3982_s18, 8192  ;;  %s3706_s15 = smov [#allocation9]  }
  0x8c   : > { %p3609_p4 = scmp.ne.s32.totalorder %s3982_s18, %s3608_s21  ;;  %s3613_s6 = sshll.u32 %s3706_s15, 4  ;;  %s3614_s6 = int_to_ptr.vmem [resolvable:$false] %s3613_s6 }
  0x8d   : > { %s3615_s19 = scalar_lea.vmem %s3614_s6, 16384  ;;  %p3616_p9 = scmp.lt.s32.totalorder %s3982_s18, %s3614_s6 }
  0x8e   : > { %p3611_p11 = pnand %p3609_p4, %p3872_p10  ;;  %p3617_p0 = scmp.lt.s32.totalorder %s3615_s19, %s3608_s21 }
  0x90   : > { %p3612_p13 = pneg %p3611_p11  ;;  %p3618_p12 = por %p3617_p0, %p3616_p9 }
  0x92   : > { %p3619_p2 = pnand %p3618_p12, %p3612_p13 }
  0x94   : > { %3622 = shalt.err (!%p3619_p2)
}
  0x95   : > { %s4626_s1 = smov 8   ;;  %s4627_s16 = smov 128  }
  0x96   : > { %3405 = dma.hbm_to_vmem [thread:$0]  (!%p3852_p8), %s3978_s25, 8192, %s3982_s18, %s629_s20, %s4627_s16, %s4627_s16, %s4626_s1  }
  0x97   : > { %p4628_p10 = scmp.ne.s32.totalorder %s4622_s24, 0 }
  0x98   : > { %s671_s17 = sand.u32 (!%p4628_p10), 1, %s3687_s28   ;;  %p4629_p7 = scmp.ne.s32.totalorder (!%p4628_p10), %s4618_s22, 0 }
  0x99   : > { %669 = sbr.rel (%p4628_p10) target bundleno = 3284 (0xcd4), region = 92  ;;  %s672_s4 = scalar_lea.sflag (!%p4628_p10), [#allocation4], %s671_s17 }
  0x9a   : > { %s3379_s3 = smul.u32 (!%p4628_p10), 384, %s671_s17 }
  0x9c   : > { %s4014_s29 = scalar_lea.vmem (!%p4628_p10), [#allocation3], %s3379_s3 }
  0xa0   : > { %3666 = dma.done.wait (%p4629_p7), %s672_s4, 6144  }
  0xa1   : > { %3668 = vsyncadd (%p4629_p7), %s672_s4, 4294961152  ;;  %s680_s2 = sand.u32 1, %s3828_s0   ;;  %s2803_s23 = sshll.u32 %s671_s17, 7 }
  0xa2   : > { %s681_s25 = scalar_lea.sflag [#allocation7], %s680_s2  ;;  %s4021_s18 = scalar_lea.vmem [#allocation6], %s2803_s23 }
  0xa3   : > { %3670 = dma.done.wait (%p4629_p7), %s681_s25, 10240  }
  0xa4   : > { %3672 = vsyncadd (%p4629_p7), %s681_s25, 4294957056  ;;  %s2804_s24 = sshll.u32 %s671_s17, 9  ;;  %s699_s30 = scalar_lea.sflag [#allocation10], %s671_s17 }
  0xa5   : > { %s4027_s20 = scalar_lea.vmem [#allocation8], %s2804_s24  ;;  %s4029_s27 = scalar_lea.vmem [#allocation9], %s2804_s24 }
  0xa6   : > { %3674 = dma.done.wait (%p4629_p7), %s699_s30, 8192  }
  0xa7   : > { %3676 = vsyncadd (%p4629_p7), %s699_s30, 4294959104  ;;  %p791_p8 = scmp.lt.s32.totalorder %s3828_s0, 1  ;;  %s4630_s19 = sld [smem:[#allocation27_spill]] }
  0xa8   : > { %p2807_p3 = scmp.ne.s32.totalorder %s3828_s0, 0 }
  0xa9   : > { %s4037_s26 = scalar_select %p791_p8, %s3828_s0, 1 }
  0xaa   : > { %820 = sbr.rel (%p2807_p3) target bundleno = 493 (0x1ed), region = 112  ;;  %s4631_s10 = sld [smem:[#allocation19_spill]] (!%p2807_p3) }
  0xab   : > { %s3380_s21 = smul.u32 3, %s4037_s26  ;;  %s2806_s24 = sshll.u32 %s4037_s26, 2 }
  0xac   : > { %s4061_s12 = scalar_lea.vmem %s4585_s11, %s2806_s24  ;;  %s810_s22 = scalar_lea.vmem %s4587_s13, %s4037_s26 }
  0xad   : > { %s4055_s25 = scalar_lea.vmem %s4579_s5, %s3380_s21  ;;  %s813_s17 = scalar_lea.vmem %s4588_s14, %s4037_s26 }
  0xae   : > { %s816_s2 = scalar_lea.vmem %s4630_s19, %s4037_s26  ;;  %s4632_s4 = sld [smem:[#allocation21_spill]] (!%p2807_p3) }
  0xaf   : > { %s4633_s1 = sld [smem:[#allocation22_spill]] (!%p2807_p3) }
  0xb0   : > { %v821_v0 = vld [vmem:[%s4631_s10] sm:$0xff] (!%p2807_p3)  ;;  %v822_v1 = vld [vmem:[%s4631_s10 + $0x8] sm:$0xff] (!%p2807_p3) }
  0xb1   : > { %825 = vadd.xlane.f32.xlu0 %v821_v0 }
  0xb4   : > { %v2808_v17 = vld [vmem:[%s4632_s4] ss:$0 sm:$0xff] }
  0xb5   : > { %827 = vadd.xlane.f32.xlu0 %v822_v1  ;;  %v2809_v19 = vld [vmem:[%s4633_s1] ss:$0 sm:$0xff] }
 0x13e   : > { %v826_v2 = vpop.xlane.xlu0 %825 }
 0x13f   : > { %v830_v3 = vmul.f32 0.0078125, %v826_v2 }
 0x141   : > { %v832_v4 = vsub.f32 %v821_v0, %v830_v3 }
 0x142   : > { %v828_v5 = vpop.xlane.xlu0 %827 }
 0x143   : > { %v831_v6 = vmul.f32 0.0078125, %v828_v5  ;;  %v834_v7 = vmul.f32 %v832_v4, %v832_v4 }
 0x145   : > { %v833_v8 = vsub.f32 %v822_v1, %v831_v6  ;;  %836 = vadd.xlane.f32.xlu1 %v834_v7 }
 0x147   : > { %v835_v9 = vmul.f32 %v833_v8, %v833_v8 }
 0x149   : > { %838 = vadd.xlane.f32.xlu1 %v835_v9 }
 0x1d2   : > { %v837_v10 = vpop.xlane.xlu1 %836 }
 0x1d3   : > { %v840_v11 = vmul.f32 0.0078125, %v837_v10 }
 0x1d5   : > { %v842_v12 = vadd.f32 1e-05, %v840_v11 }
 0x1d6   : > { %v839_v13 = vpop.xlane.xlu1 %838 }
 0x1d7   : > { %3454 = vrsqrt.f32 %v842_v12  ;;  %v841_v14 = vmul.f32 0.0078125, %v839_v13 }
 0x1d9   : > { %v843_v15 = vadd.f32 1e-05, %v841_v14 }
 0x1db   : > { %3456 = vrsqrt.f32 %v843_v15 }
 0x1e1   : > { %v3455_v16 = vpop.eup %3454 }
 0x1e2   : > { %v846_v18 = vmul.f32 %v3455_v16, %v832_v4 }
 0x1e4   : > { %v854_v20 = vmul.f32 %v2808_v17, %v846_v18 }
 0x1e5   : > { %v3457_v21 = vpop.eup %3456 }
 0x1e6   : > { %v862_v22 = vadd.f32 %v2809_v19, %v854_v20  ;;  %v847_v23 = vmul.f32 %v3457_v21, %v833_v8 }
 0x1e8   : > { %864 = vst [vmem:[#allocation2] sm:$0xff] %v862_v22  ;;  %v855_v24 = vmul.f32 %v2808_v17, %v847_v23 }
 0x1ea   : > { %v863_v25 = vadd.f32 %v2809_v19, %v855_v24 }
 0x1ec   : > { %865 = vst [vmem:[#allocation2 + $0x8] sm:$0xff] %v863_v25 }
 0x1ed PF: > { %v869_v26 = vld [vmem:[%s4014_s29 + $0x8] sm:$0xff]  ;;  %v872_v27 = vld [vmem:[%s4014_s29 + $0x20] sm:$0xff]  ;;  %v871_v30 = vld [vmem:[%s4014_s29 + $0x18] sm:$0xff]  ;;  %v3707_v33 = vmov 0.0   ;;  %vm3708_vm0 = vmmov 0   ;;  %v918_v13 = vlaneseq  ;;  %vm1121_vm1 = vcmask 523264   ;;  %s4635_s19 = scalar_lea.vmem %s4581_s7, %s4037_s26  ;;  %s4636_s4 = scalar_lea.vmem %s4582_s8, %s4037_s26 }
 0x1ee   : > { %v868_v28 = vld [vmem:[%s4014_s29] sm:$0xff]  ;;  %v3129_v29 = vpack.c.bf16 %v872_v27, %v869_v26  ;;  %v875_v31 = vld [vmem:[%s4014_s29 + $0x38] sm:$0xff]  ;;  %v878_v32 = vld [vmem:[%s4014_s29 + $0x50] sm:$0xff]  ;;  %997 = vmatprep.mubr.f32.mxu0 %v3707_v33  ;;  %s3709_s3 = smov 64   ;;  %s4634_s21 = sld [smem:[#allocation20_spill]]  ;;  %vm1418_vm2 = vcmask 64512  }
 0x1ef   : > { %v3131_v34 = vpack.c.bf16 %v871_v30, %v868_v28  ;;  %v3133_v35 = vpack.c.bf16 %v878_v32, %v875_v31  ;;  %v874_v36 = vld [vmem:[%s4014_s29 + $0x30] sm:$0xff]  ;;  %v877_v37 = vld [vmem:[%s4014_s29 + $0x48] sm:$0xff]  ;;  %v884_v39 = vld [vmem:[%s4014_s29 + $0x80] sm:$0xff]  ;;  %v4132_v14 = vshrl.u32 %v918_v13, 7  ;;  %s4637_s1 = scalar_lea.vmem %s4583_s9, %s4037_s26  ;;  %p2830_p5 = scmp.ne.s32.totalorder %s3828_s0, 1 }
 0x1f0   : > { %v881_v38 = vld [vmem:[%s4014_s29 + $0x68] sm:$0xff]  ;;  %3130 = vmatprep.subr.bf16.mxu0 %v3129_v29  ;;  %v3135_v40 = vpack.c.bf16 %v877_v37, %v874_v36  ;;  %v880_v42 = vld [vmem:[%s4014_s29 + $0x60] sm:$0xff]  ;;  %v883_v43 = vld [vmem:[%s4014_s29 + $0x78] sm:$0xff]  ;;  %vm3711_vm3 = vmmov (!%p2830_p5), 0   ;;  %vm2513_vm4 = vcmask (!%p2830_p5), 1041409   ;;  %vm2586_vm5 = vcmask (!%p2830_p5), 33792  }
 0x1f1   : > { %3132 = vmatpush1.bf16.msra.mxu0 %v3131_v34  ;;  %v3137_v41 = vpack.c.bf16 %v884_v39, %v881_v38  ;;  %v887_v44 = vld [vmem:[%s4014_s29 + $0x98] sm:$0xff]  ;;  %v890_v45 = vld [vmem:[%s4014_s29 + $0xb0] sm:$0xff]  ;;  %v3139_v46 = vpack.c.bf16 %v883_v43, %v880_v42  ;;  %v889_v49 = vld [vmem:[%s4014_s29 + $0xa8] sm:$0xff]  ;;  %v920_v15 = vsub.s32 0, %v4132_v14  ;;  %v924_v17 = vsub.s32 1, %v4132_v14 }
 0x1f2   : > { %3134 = vmatprep.subr.bf16.mxu0 %v3133_v35  ;;  %v3141_v47 = vpack.c.bf16 %v890_v45, %v887_v44  ;;  %v886_v48 = vld [vmem:[%s4014_s29 + $0x90] sm:$0xff]  ;;  %v893_v50 = vld [vmem:[%s4014_s29 + $0xc8] sm:$0xff]  ;;  %v896_v51 = vld [vmem:[%s4014_s29 + $0xe0] sm:$0xff] }
 0x1f3   : > { %v4107_v52 = vld [vmem:[#allocation2] sm:$0xff]  ;;  %v3143_v53 = vpack.c.bf16 %v889_v49, %v886_v48  ;;  %v3145_v54 = vpack.c.bf16 %v896_v51, %v893_v50  ;;  %v892_v55 = vld [vmem:[%s4014_s29 + $0xc0] sm:$0xff]  ;;  %v895_v56 = vld [vmem:[%s4014_s29 + $0xd8] sm:$0xff] }
 0x1f4   : > { %3016 = vmatprep.mubr.f32.mxu1 %v4107_v52  ;;  %v899_v57 = vld [vmem:[%s4014_s29 + $0xf8] sm:$0xff]  ;;  %v902_v58 = vld [vmem:[%s4014_s29 + $0x110] sm:$0xff]  ;;  %v3147_v59 = vpack.c.bf16 %v895_v56, %v892_v55  ;;  %v901_v62 = vld [vmem:[%s4014_s29 + $0x108] sm:$0xff] }
 0x1f5   : > { %3136 = vmatpush1.bf16.msra.mxu0 %v3135_v40  ;;  %v3149_v60 = vpack.c.bf16 %v902_v58, %v899_v57  ;;  %v898_v61 = vld [vmem:[%s4014_s29 + $0xf0] sm:$0xff]  ;;  %v905_v63 = vld [vmem:[%s4014_s29 + $0x128] sm:$0xff]  ;;  %v908_v0 = vld [vmem:[%s4014_s29 + $0x140] sm:$0xff] }
 0x1f6   : > { %3138 = vmatprep.subr.bf16.mxu0 %v3137_v41  ;;  %v3151_v1 = vpack.c.bf16 %v901_v62, %v898_v61  ;;  %v3153_v2 = vpack.c.bf16 %v908_v0, %v905_v63  ;;  %v904_v3 = vld [vmem:[%s4014_s29 + $0x120] sm:$0xff]  ;;  %v907_v4 = vld [vmem:[%s4014_s29 + $0x138] sm:$0xff]  ;;  %v914_v6 = vld [vmem:[%s4014_s29 + $0x170] sm:$0xff] }
 0x1f7   : > { %v911_v5 = vld [vmem:[%s4014_s29 + $0x158] sm:$0xff]  ;;  %v3155_v7 = vpack.c.bf16 %v907_v4, %v904_v3  ;;  %v910_v9 = vld [vmem:[%s4014_s29 + $0x150] sm:$0xff]  ;;  %v913_v10 = vld [vmem:[%s4014_s29 + $0x168] sm:$0xff] }
 0x1f8   : > { %v3157_v8 = vpack.c.bf16 %v914_v6, %v911_v5  ;;  %v3159_v11 = vpack.c.bf16 %v913_v10, %v910_v9  ;;  %v4127_v12 = vld [vmem:[#allocation2 + $0x8] sm:$0xff]  ;;  %v4136_v16 = vld [vmem:[%s4055_s25] sm:$0x7]  ;;  %v873_v31 = vld [vmem:[%s4014_s29 + $0x28] sm:$0xff] }
 0x1f9   : > { %3140 = vmatpush1.bf16.msra.mxu0 %v3139_v46  ;;  %v921_v18 = vrot.slane %v4136_v16, %v920_v15  ;;  %v925_v19 = vrot.slane %v4136_v16, %v924_v17  ;;  %v870_v30 = vld [vmem:[%s4014_s29 + $0x10] sm:$0xff]  ;;  %v876_v32 = vld [vmem:[%s4014_s29 + $0x40] sm:$0xff]  ;;  %v879_v35 = vld [vmem:[%s4014_s29 + $0x58] sm:$0xff] }
 0x1fa   : > { %3142 = vmatprep.subr.bf16.mxu0 %v3141_v47  ;;  %v3161_v34 = vpack.c.bf16 %v873_v31, %v870_v30  ;;  %v3165_v36 = vpack.c.bf16 %v879_v35, %v876_v32  ;;  %v882_v37 = vld [vmem:[%s4014_s29 + $0x70] sm:$0xff]  ;;  %v885_v38 = vld [vmem:[%s4014_s29 + $0x88] sm:$0xff]  ;;  %v888_v40 = vld [vmem:[%s4014_s29 + $0xa0] sm:$0xff] }
 0x1fb   : > { %v3169_v39 = vpack.c.bf16 %v885_v38, %v882_v37  ;;  %v891_v41 = vld [vmem:[%s4014_s29 + $0xb8] sm:$0xff]  ;;  %v894_v43 = vld [vmem:[%s4014_s29 + $0xd0] sm:$0xff]  ;;  %v897_v44 = vld [vmem:[%s4014_s29 + $0xe8] sm:$0xff] }
 0x1fc   : > { %3162 = vmatprep.subr.bf16.mxu1 %v3161_v34  ;;  %v3173_v42 = vpack.c.bf16 %v891_v41, %v888_v40  ;;  %v3177_v45 = vpack.c.bf16 %v897_v44, %v894_v43  ;;  %v900_v46 = vld [vmem:[%s4014_s29 + $0x100] sm:$0xff]  ;;  %v903_v47 = vld [vmem:[%s4014_s29 + $0x118] sm:$0xff]  ;;  %v906_v50 = vld [vmem:[%s4014_s29 + $0x130] sm:$0xff] }
 0x1fd   : > { %3144 = vmatpush1.bf16.msra.mxu0 %v3143_v53  ;;  %3164 = vmatpush3.bf16.msra.mxu1 %v3161_v34  ;;  %v3181_v48 = vpack.c.bf16 %v903_v47, %v900_v46  ;;  %v909_v51 = vld [vmem:[%s4014_s29 + $0x148] sm:$0xff]  ;;  %v915_v55 = vld [vmem:[%s4014_s29 + $0x178] sm:$0xff] }
 0x1fe   : > { %3146 = vmatprep.subr.bf16.mxu0 %v3145_v54  ;;  %3166 = vmatprep.subr.bf16.mxu1 %v3165_v36  ;;  %v3185_v53 = vpack.c.bf16 %v909_v51, %v906_v50  ;;  %v912_v54 = vld [vmem:[%s4014_s29 + $0x160] sm:$0xff] }
 0x1ff   : > { %v3189_v58 = vpack.c.bf16 %v915_v55, %v912_v54 }
 0x201   : > { %3148 = vmatpush1.bf16.msra.mxu0 %v3147_v59  ;;  %3168 = vmatpush3.bf16.msra.mxu1 %v3165_v36 }
 0x202   : > { %3150 = vmatprep.subr.bf16.mxu0 %v3149_v60  ;;  %3170 = vmatprep.subr.bf16.mxu1 %v3169_v39  ;;  %v2810_v60 = vld [vmem:[%s4634_s21] ss:$0 sm:$0xff] }
 0x205   : > { %3152 = vmatpush1.bf16.msra.mxu0 %v3151_v1  ;;  %3172 = vmatpush3.bf16.msra.mxu1 %v3169_v39  ;;  %v2811_v1 = vld [vmem:[%s4634_s21 + $0x1] ss:$0 sm:$0xff] }
 0x206   : > { %3154 = vmatprep.subr.bf16.mxu0 %v3153_v2  ;;  %3174 = vmatprep.subr.bf16.mxu1 %v3173_v42 }
 0x209   : > { %3156 = vmatpush1.bf16.msra.mxu0 %v3155_v7  ;;  %3176 = vmatpush3.bf16.msra.mxu1 %v3173_v42 }
 0x20a   : > { %3158 = vmatprep.subr.bf16.mxu0 %v3157_v8  ;;  %3178 = vmatprep.subr.bf16.mxu1 %v3177_v45 }
 0x20d   : > { %3160 = vmatpush1.bf16.msra.mxu0 %v3159_v11  ;;  %3180 = vmatpush3.bf16.msra.mxu1 %v3177_v45 }
 0x20e   : > { %3019 = vmatprep.subr.mxu0 %v3707_v33  ;;  %3182 = vmatprep.subr.bf16.mxu1 %v3181_v48 }
 0x210   : > { %998 = vmatmul.mubr.f32.vlgmr.msra.gmra.mrb[0].mxu0 %v4107_v52 }
 0x211   : > { %1003 = vmatprep.mubr.f32.mxu0 %v3707_v33  ;;  %3184 = vmatpush3.bf16.msra.mxu1 %v3181_v48 }
 0x212   : > { %3186 = vmatprep.subr.bf16.mxu1 %v3185_v53 }
 0x214   : > { %1004 = vmatmul.mubr.f32.gmra.mrb[2].mxu0 %v4127_v12 }
 0x215   : > { %3021 = vmatprep.mubr.msk.f32.mxu0 %vm3708_vm0, %v3707_v33  ;;  %3188 = vmatpush3.bf16.msra.mxu1 %v3185_v53 }
 0x216   : > { %3190 = vmatprep.subr.bf16.mxu1 %v3189_v58 }
 0x219   : > { %3192 = vmatpush3.bf16.msra.mxu1 %v3189_v58 }
 0x21a   : > { %3049 = vmatprep.subr.mxu1 %v3707_v33 }
 0x21c   : > { %3017 = vmatmul.mubr.f32.vlgmr.msra.gmra.mrb[0].mxu1 %v4127_v12 }
 0x21d   : > { %3051 = vmatprep.mubr.msk.f32.mxu1 %vm3708_vm0, %v3707_v33 }
 0x2e3   : > { %v999_v20 = vpop.f32.mrb[0].mxu0 }
 0x2e4   : > { %v1000_v21 = vadd.f32 %v999_v20, %v921_v18  ;;  %v1001_v22 = vpop.f32.mrb[1].mxu0 }
 0x2e5   : > { %v1002_v23 = vadd.f32 %v1001_v22, %v925_v19 }
 0x2e6   : > { %v1085_v25 = vmul.f32 0.125, %v1000_v21 }
 0x2e7   : > { %v1005_v24 = vpop.f32.mrb[2].mxu0  ;;  %1095 = vrot.lane.b32.xlu0 %v1002_v23, %s3709_s3  ;;  %3020 = vmatpush3.xpose.msk.msra.mxu0 %vm1121_vm1, %v1002_v23 }
 0x2e8   : > { %v1007_v26 = vpop.f32.mrb[3].mxu0  ;;  %3024 = vmatprep.subr.mxu0 %v3707_v33  ;;  %v1006_v27 = vadd.f32 %v1005_v24, %v921_v18 }
 0x2e9   : > { %v1008_v28 = vadd.f32 %v1007_v26, %v925_v19 }
 0x2ea   : > { %3022 = vmatmul.mubr.msk.f32.vlgmr.msra.gmra.mrb[4].mxu0 %vm1121_vm1, %v1085_v25  ;;  %v1086_v29 = vmul.f32 0.125, %v1006_v27 }
 0x2eb   : > { %1097 = vrot.lane.b32.xlu1 %v1008_v28, %s3709_s3  ;;  %1089 = vrot.lane.b32.xlu0 %v1085_v25, %s3709_s3 }
 0x2ec   : > { %3025 = vmatpush3.xpose.msk.msra.mxu0 %vm1121_vm1, %v1008_v28  ;;  %3026 = vmatprep.mubr.msk.f32.mxu0 %vm3708_vm0, %v3707_v33 }
 0x2ed   : > { %3029 = vmatprep.subr.mxu0 %v3707_v33 }
 0x2ef   : > { %3027 = vmatmul.mubr.msk.f32.vlgmr.msra.gmra.mrb[6].mxu0 %vm1121_vm1, %v1086_v29  ;;  %1091 = vrot.lane.b32.xlu1 %v1086_v29, %s3709_s3  ;;  %v928_v29 = vsub.s32 2, %v4132_v14  ;;  %v3018_v31 = vpop.f32.mrb[0].mxu1 }
 0x2f0   : > { %3031 = vmatprep.mubr.msk.f32.mxu0 %vm3708_vm0, %v3707_v33  ;;  %v1076_v32 = vpop.f32.mrb[1].mxu1 }
 0x2f1   : > { %v929_v30 = vrot.slane %v4136_v16, %v928_v29 }
 0x2f3   : > { %v1077_v34 = vadd.f32 %v1076_v32, %v929_v30  ;;  %v1082_v35 = vadd.f32 %v3018_v31, %v929_v30 }
 0x359   : > { %v1096_v49 = vpop.permute.xlu0 %1095 }
 0x35a   : > { %3030 = vmatpush3.xpose.msk.msra.mxu0 %vm1121_vm1, %v1096_v49 }
 0x35b   : > { %3034 = vmatprep.subr.mxu0 %v3707_v33 }
 0x35d   : > { %v1098_v56 = vpop.permute.xlu1 %1097  ;;  %v1090_v57 = vpop.permute.xlu0 %1089 }
 0x35e   : > { %3032 = vmatmul.mubr.msk.f32.vlgmr.msra.gmra.mrb[8].mxu0 %vm1121_vm1, %v1090_v57 }
 0x35f   : > { %3035 = vmatpush3.xpose.msk.msra.mxu0 %vm1121_vm1, %v1098_v56  ;;  %3036 = vmatprep.mubr.msk.f32.mxu0 %vm3708_vm0, %v3707_v33 }
 0x360   : > { %3039 = vmatprep.subr.mxu0 %v3707_v33 }
 0x361   : > { %v1092_v59 = vpop.permute.xlu1 %1091 }
 0x362   : > { %3037 = vmatmul.mubr.msk.f32.vlgmr.msra.gmra.mrb[10].mxu0 %vm1121_vm1, %v1092_v59 }
 0x363   : > { %3041 = vmatprep.mubr.msk.f32.mxu0 %vm3708_vm0, %v3707_v33  ;;  %3040 = vmatpush3.msra.mxu0 %v1077_v34 }
 0x364   : > { %3044 = vmatprep.subr.mxu0 %v3707_v33 }
 0x3bd   : > { %v1192_v61 = vpop.f32.mrb[4].mxu0 }
 0x3be   : > { %v1193_v62 = vadd.f32 %v2810_v60, %v1192_v61  ;;  %v3023_v63 = vpop.f32.mrb[5].mxu0  ;;  %v1766_v61 = vld [vmem:[%s4021_s18 + $0x8] sm:$0xff] }
 0x3c0   : > { %v1419_v0 = vsel %vm1418_vm2, %v1193_v62, -inf }
 0x3c1   : > { %1420 = vmax.xlane.f32.xlu0 %v1419_v0  ;;  %v1768_v0 = vld [vmem:[%s4021_s18 + $0x18] sm:$0xff] }
 0x3c2   : > { %v1266_v2 = vpop.f32.mrb[6].mxu0 }
 0x3c3   : > { %v1267_v3 = vadd.f32 %v2811_v1, %v1266_v2  ;;  %v3028_v4 = vpop.f32.mrb[7].mxu0  ;;  %v1769_v2 = vld [vmem:[%s4021_s18 + $0x20] sm:$0xff] }
 0x3c5   : > { %v1422_v5 = vsel %vm1418_vm2, %v1267_v3, -inf }
 0x3c6   : > { %1423 = vmax.xlane.f32.xlu1 %v1422_v5 }
 0x431   : > { %v1340_v6 = vpop.f32.mrb[8].mxu0 }
 0x432   : > { %v1341_v7 = vadd.f32 %v2810_v60, %v1340_v6  ;;  %v3033_v8 = vpop.f32.mrb[9].mxu0  ;;  %v1765_v60 = vld [vmem:[%s4021_s18] sm:$0xff] }
 0x433   : > { %v3193_v63 = vpack.c.bf16 %v1766_v61, %v1765_v60  ;;  %v1772_v8 = vld [vmem:[%s4021_s18 + $0x38] sm:$0xff] }
 0x434   : > { %v1425_v9 = vsel %vm1418_vm2, %v1341_v7, -inf  ;;  %v1917_v60 = vld [vmem:[%s4027_s20 + $0x58] sm:$0xff] }
 0x435   : > { %1426 = vmax.xlane.f32.xlu0 %v1425_v9  ;;  %v1414_v10 = vpop.f32.mrb[10].mxu0  ;;  %v1921_v61 = vld [vmem:[%s4027_s20 + $0x78] sm:$0xff] }
 0x436   : > { %v1415_v11 = vadd.f32 %v2811_v1, %v1414_v10  ;;  %v3038_v13 = vpop.f32.mrb[11].mxu0 }
 0x437   : > { %v1774_v13 = vld [vmem:[%s4021_s18 + $0x48] sm:$0xff] }
 0x438   : > { %v1428_v18 = vsel %vm1418_vm2, %v1415_v11, -inf }
 0x439   : > { %1429 = vmax.xlane.f32.xlu0 %v1428_v18 }
 0x44e   : > { %v1421_v19 = vpop.xlane.xlu0 %1420 }
 0x44f   : > { %v1431_v20 = vsub.f32 %v1193_v62, %v1421_v19  ;;  %v1767_v62 = vld [vmem:[%s4021_s18 + $0x10] sm:$0xff] }
 0x450   : > { %v3197_v1 = vpack.c.bf16 %v1768_v0, %v1767_v62  ;;  %v1914_v0 = vld [vmem:[%s4027_s20 + $0x40] sm:$0xff] }
 0x451   : > { %v1435_v21 = vmul.f32 1.442695, %v1431_v20  ;;  %v1775_v20 = vld [vmem:[%s4021_s18 + $0x50] sm:$0xff] }
 0x453   : > { %3463 = vpow2.f32 %v1435_v21  ;;  %v1424_v22 = vpop.xlane.xlu1 %1423  ;;  %v1776_v21 = vld [vmem:[%s4021_s18 + $0x58] sm:$0xff] }
 0x454   : > { %v1432_v23 = vsub.f32 %v1267_v3, %v1424_v22  ;;  %v1770_v3 = vld [vmem:[%s4021_s18 + $0x28] sm:$0xff]  ;;  %v3213_v22 = vpack.c.bf16 %v1776_v21, %v1775_v20  ;;  %v1928_v20 = vld [vmem:[%s4027_s20 + $0xb0] sm:$0xff] }
 0x455   : > { %v3201_v5 = vpack.c.bf16 %v1770_v3, %v1769_v2  ;;  %v1916_v2 = vld [vmem:[%s4027_s20 + $0x50] sm:$0xff] }
 0x456   : > { %v1437_v24 = vmul.f32 1.442695, %v1432_v23  ;;  %v1777_v23 = vld [vmem:[%s4021_s18 + $0x60] sm:$0xff] }
 0x458   : > { %3465 = vpow2.f32 %v1437_v24  ;;  %v1778_v24 = vld [vmem:[%s4021_s18 + $0x68] sm:$0xff] }
 0x45d   : > { %v3464_v25 = vpop.eup %3463 }
 0x45e   : > { %v1443_v26 = vsel %vm1418_vm2, %v3464_v25, 0.0 }
 0x45f   : > { %1444 = vadd.xlane.f32.xlu1 %v1443_v26  ;;  %v1779_v26 = vld [vmem:[%s4021_s18 + $0x70] sm:$0xff] }
 0x462   : > { %v3466_v27 = vpop.eup %3465 }
 0x463   : > { %v1446_v28 = vsel %vm1418_vm2, %v3466_v27, 0.0 }
 0x464   : > { %1447 = vadd.xlane.f32.xlu0 %v1446_v28 }
 0x4c2   : > { %v1427_v36 = vpop.xlane.xlu0 %1426 }
 0x4c3   : > { %v1433_v37 = vsub.f32 %v1341_v7, %v1427_v36  ;;  %v1771_v7 = vld [vmem:[%s4021_s18 + $0x30] sm:$0xff] }
 0x4c4   : > { %v3205_v9 = vpack.c.bf16 %v1772_v8, %v1771_v7 }
 0x4c5   : > { %v1439_v38 = vmul.f32 1.442695, %v1433_v37 }
 0x4c6   : > { %v1430_v39 = vpop.xlane.xlu0 %1429 }
 0x4c7   : > { %3467 = vpow2.f32 %v1439_v38  ;;  %v1434_v40 = vsub.f32 %v1415_v11, %v1430_v39  ;;  %v1773_v11 = vld [vmem:[%s4021_s18 + $0x40] sm:$0xff] }
 0x4c8   : > { %v3209_v19 = vpack.c.bf16 %v1774_v13, %v1773_v11  ;;  %v1922_v11 = vld [vmem:[%s4027_s20 + $0x80] sm:$0xff] }
 0x4c9   : > { %v1441_v41 = vmul.f32 1.442695, %v1434_v40 }
 0x4cb   : > { %3469 = vpow2.f32 %v1441_v41  ;;  %v2824_v41 = vld [vmem:[%s4635_s19] ss:$0 sm:$0xff] }
 0x4d1   : > { %v3468_v42 = vpop.eup %3467 }
 0x4d2   : > { %v1449_v43 = vsel %vm1418_vm2, %v3468_v42, 0.0 }
 0x4d3   : > { %1450 = vadd.xlane.f32.xlu1 %v1449_v43 }
 0x4d5   : > { %v3470_v16 = vpop.eup %3469 }
 0x4d6   : > { %v1452_v44 = vsel %vm1418_vm2, %v3470_v16, 0.0 }
 0x4d7   : > { %1453 = vadd.xlane.f32.xlu0 %v1452_v44 }
 0x4e4   : > { %1101 = vrot.lane.b32.xlu1 %v1077_v34, %s3709_s3 }
 0x4ec   : > { %v1445_v45 = vpop.xlane.xlu1 %1444 }
 0x4ed   : > { %3471 = vrcp.f32 %v1445_v45  ;;  %1103 = vrot.lane.b32.xlu0 %v1082_v35, %s3709_s3 }
 0x4f1   : > { %v1448_v46 = vpop.xlane.xlu0 %1447 }
 0x4f2   : > { %3473 = vrcp.f32 %v1448_v46 }
 0x4f7   : > { %v3472_v47 = vpop.eup %3471 }
 0x4f8   : > { %v1459_v48 = vmul.f32 %v3472_v47, %v3464_v25  ;;  %v3217_v25 = vpack.c.bf16 %v1778_v24, %v1777_v23  ;;  %v1907_v47 = vld [vmem:[%s4027_s20 + $0x8] sm:$0xff] }
 0x4fa   : > { %3042 = vmatmul.mubr.msk.f32.vlgmr.msra.gmra.mrb[12].mxu0 %vm1418_vm2, %v1459_v48  ;;  %v1911_v48 = vld [vmem:[%s4027_s20 + $0x28] sm:$0xff] }
 0x4fb   : > { %3045 = vmatpush3.msra.mxu0 %v1082_v35  ;;  %3046 = vmatprep.mubr.msk.f32.mxu0 %vm3708_vm0, %v3707_v33 }
 0x4fc   : > { %v3474_v49 = vpop.eup %3473  ;;  %3054 = vmatprep.subr.mxu0 %v3707_v33 }
 0x4fd   : > { %v1460_v50 = vmul.f32 %v3474_v49, %v3466_v27  ;;  %v1780_v27 = vld [vmem:[%s4021_s18 + $0x78] sm:$0xff] }
 0x4fe   : > { %v3221_v28 = vpack.c.bf16 %v1780_v27, %v1779_v26  ;;  %v1909_v49 = vld [vmem:[%s4027_s20 + $0x18] sm:$0xff] }
 0x4ff   : > { %3047 = vmatmul.mubr.msk.f32.vlgmr.msra.gmra.mrb[14].mxu0 %vm1418_vm2, %v1460_v50  ;;  %v3225_v50 = vpack.c.bf16 %v1911_v48, %v1907_v47  ;;  %v1945_v48 = vld [vmem:[%s4027_s20 + $0x138] sm:$0xff] }
 0x500   : > { %3056 = vmatprep.mubr.msk.f32.mxu0 %vm3708_vm0, %v3707_v33 }
 0x560   : > { %v1451_v51 = vpop.xlane.xlu1 %1450 }
 0x561   : > { %3475 = vrcp.f32 %v1451_v51  ;;  %v1913_v51 = vld [vmem:[%s4027_s20 + $0x38] sm:$0xff] }
 0x564   : > { %v1454_v53 = vpop.xlane.xlu0 %1453  ;;  %v1102_v54 = vpop.permute.xlu1 %1101 }
 0x565   : > { %3477 = vrcp.f32 %v1454_v53  ;;  %3050 = vmatpush3.msra.mxu1 %v1102_v54  ;;  %v1906_v53 = vld [vmem:[%s4027_s20] sm:$0xff] }
 0x566   : > { %3194 = vmatprep.subr.bf16.mxu1 %v3193_v63  ;;  %v1910_v54 = vld [vmem:[%s4027_s20 + $0x20] sm:$0xff] }
 0x568   : > { %v1104_v55 = vpop.permute.xlu0 %1103 }
 0x569   : > { %3055 = vmatpush3.msra.mxu0 %v1104_v55  ;;  %v3257_v55 = vpack.c.bf16 %v1913_v51, %v1909_v49  ;;  %v1938_v49 = vld [vmem:[%s4027_s20 + $0x100] sm:$0xff] }
 0x56a   : > { %3226 = vmatprep.subr.bf16.mxu0 %v3225_v50  ;;  %v1942_v50 = vld [vmem:[%s4027_s20 + $0x120] sm:$0xff] }
 0x56b   : > { %v3476_v56 = vpop.eup %3475 }
 0x56c   : > { %v1461_v57 = vmul.f32 %v3476_v56, %v3468_v42  ;;  %v3227_v56 = vpack.c.bf16 %v1910_v54, %v1906_v53  ;;  %v3243_v53 = vpack.c.bf16 %v1942_v50, %v1938_v49  ;;  %v1940_v54 = vld [vmem:[%s4027_s20 + $0x110] sm:$0xff]  ;;  %v2235_v50 = vld [vmem:[%s4029_s27 + $0x88] sm:$0xff] }
 0x56e   : > { %3052 = vmatmul.mubr.msk.f32.vlgmr.msra.gmra.mrb[2].mxu1 %vm1418_vm2, %v1461_v57  ;;  %v1912_v57 = vld [vmem:[%s4027_s20 + $0x30] sm:$0xff] }
 0x56f   : > { %v3478_v58 = vpop.eup %3477  ;;  %3196 = vmatpush3.bf16.msra.mxu1 %v3193_v63  ;;  %v3261_v63 = vpack.c.bf16 %v1921_v61, %v1917_v60  ;;  %v1946_v61 = vld [vmem:[%s4027_s20 + $0x140] sm:$0xff] }
 0x570   : > { %v1462_v59 = vmul.f32 %v3478_v58, %v3470_v16  ;;  %3198 = vmatprep.subr.bf16.mxu1 %v3197_v1 }
 0x572   : > { %3057 = vmatmul.mubr.msk.f32.vlgmr.msra.gmra.mrb[16].mxu0 %vm1418_vm2, %v1462_v59  ;;  %v1919_v59 = vld [vmem:[%s4027_s20 + $0x68] sm:$0xff] }
 0x573   : > { %2056 = vmatprep.mubr.f32.mxu0 %v3707_v33  ;;  %3200 = vmatpush3.bf16.msra.mxu1 %v3197_v1  ;;  %v1918_v1 = vld [vmem:[%s4027_s20 + $0x60] sm:$0xff] }
 0x574   : > { %3202 = vmatprep.subr.bf16.mxu1 %v3201_v5  ;;  %3228 = vmatpush1.bf16.msra.mxu0 %v3227_v56  ;;  %v3231_v3 = vpack.c.bf16 %v1918_v1, %v1914_v0  ;;  %v1947_v56 = vld [vmem:[%s4027_s20 + $0x148] sm:$0xff]  ;;  %v1952_v1 = vld [vmem:[%s4027_s20 + $0x170] sm:$0xff] }
 0x577   : > { %3204 = vmatpush3.bf16.msra.mxu1 %v3201_v5  ;;  %v1923_v5 = vld [vmem:[%s4027_s20 + $0x88] sm:$0xff] }
 0x578   : > { %3206 = vmatprep.subr.bf16.mxu1 %v3205_v9 }
 0x57b   : > { %3208 = vmatpush3.bf16.msra.mxu1 %v3205_v9  ;;  %v1925_v9 = vld [vmem:[%s4027_s20 + $0x98] sm:$0xff] }
 0x57c   : > { %3210 = vmatprep.subr.bf16.mxu1 %v3209_v19 }
 0x57f   : > { %3212 = vmatpush3.bf16.msra.mxu1 %v3209_v19  ;;  %v1924_v19 = vld [vmem:[%s4027_s20 + $0x90] sm:$0xff] }
 0x580   : > { %3214 = vmatprep.subr.bf16.mxu1 %v3213_v22 }
 0x583   : > { %3216 = vmatpush3.bf16.msra.mxu1 %v3213_v22  ;;  %v3267_v22 = vpack.c.bf16 %v1928_v20, %v1924_v19  ;;  %v1963_v19 = vld [vmem:[%s4027_s20 + $0x1c8] sm:$0xff] }
 0x584   : > { %3218 = vmatprep.subr.bf16.mxu1 %v3217_v25  ;;  %v1967_v20 = vld [vmem:[%s4027_s20 + $0x1e8] sm:$0xff] }
 0x587   : > { %3220 = vmatpush3.bf16.msra.mxu1 %v3217_v25 }
 0x588   : > { %3222 = vmatprep.subr.bf16.mxu1 %v3221_v28 }
 0x58b   : > { %3224 = vmatpush3.bf16.msra.mxu1 %v3221_v28 }
 0x58c   : > { %3258 = vmatprep.subr.bf16.mxu1 %v3257_v55  ;;  %v1944_v55 = vld [vmem:[%s4027_s20 + $0x130] sm:$0xff] }
 0x5cd   : > { %v1532_v4 = vpop.f32.mrb[12].mxu0 }
 0x5ce   : > { %v3043_v6 = vpop.f32.mrb[13].mxu0 }
 0x5cf   : > { %v1927_v6 = vld [vmem:[%s4027_s20 + $0xa8] sm:$0xff] }
 0x5d0   : > { %v3233_v8 = vpack.c.bf16 %v1927_v6, %v1923_v5  ;;  %v1957_v6 = vld [vmem:[%s4027_s20 + $0x198] sm:$0xff] }
 0x5d2   : > { %v1605_v10 = vpop.f32.mrb[14].mxu0 }
 0x5d3   : > { %v3048_v18 = vpop.f32.mrb[15].mxu0 }
 0x5d4   : > { %v1926_v18 = vld [vmem:[%s4027_s20 + $0xa0] sm:$0xff] }
 0x5d5   : > { %v3235_v21 = vpack.c.bf16 %v1926_v18, %v1922_v11  ;;  %v1956_v11 = vld [vmem:[%s4027_s20 + $0x190] sm:$0xff] }
 0x641   : > { %v1678_v30 = vpop.f32.mrb[2].mxu1 }
 0x642   : > { %v3053_v31 = vpop.f32.mrb[3].mxu1 }
 0x645   : > { %v1751_v32 = vpop.f32.mrb[16].mxu0 }
 0x646   : > { %v3458_v34 = vpack.i.bf16 %v1751_v32, %v1678_v30  ;;  %v3058_v35 = vpop.f32.mrb[17].mxu0  ;;  %v1931_v32 = vld [vmem:[%s4027_s20 + $0xc8] sm:$0xff] }
 0x647   : > { %v1933_v35 = vld [vmem:[%s4027_s20 + $0xd8] sm:$0xff] }
 0x648   : > { %3459 = vrot.lane.b32.xlu1 %v3458_v34, %s3709_s3  ;;  %v1935_v34 = vld [vmem:[%s4027_s20 + $0xe8] sm:$0xff]  ;;  %s4640_s3 = sld [smem:[#allocation29_spill]] (!%p2830_p5) }
 0x6ba   : > { %v3460_v36 = vpop.permute.xlu1 %3459 }
 0x6bb   : > { %v3462_v37 = vunpack.i.h.bf16 %v3460_v36  ;;  %v3461_v38 = vunpack.i.l.bf16 %v3460_v36  ;;  %v3237_v36 = vpack.c.bf16 %v1935_v34, %v1931_v32  ;;  %v1968_v32 = vld [vmem:[%s4027_s20 + $0x1f0] sm:$0xff] }
 0x6bd   : > { %v1763_v39 = vsel %vm1121_vm1, %v1532_v4, %v3461_v38  ;;  %v1764_v40 = vsel %vm1121_vm1, %v1605_v10, %v3462_v37  ;;  %v1920_v4 = vld [vmem:[%s4027_s20 + $0x70] sm:$0xff]  ;;  %v1929_v10 = vld [vmem:[%s4027_s20 + $0xb8] sm:$0xff]  ;;  %v1930_v38 = vld [vmem:[%s4027_s20 + $0xc0] sm:$0xff] }
 0x6be   : > { %3091 = vmatprep.mubr.f32.mxu1 %v1763_v39  ;;  %v3263_v7 = vpack.c.bf16 %v1920_v4, %v1916_v2  ;;  %v3265_v13 = vpack.c.bf16 %v1929_v10, %v1925_v9  ;;  %v1937_v37 = vld [vmem:[%s4027_s20 + $0xf8] sm:$0xff]  ;;  %v1934_v39 = vld [vmem:[%s4027_s20 + $0xe0] sm:$0xff]  ;;  %v1955_v2 = vld [vmem:[%s4027_s20 + $0x188] sm:$0xff] }
 0x6bf   : > { %3092 = vmatmul.mubr.f32.vlgmr.msra.gmra.mrb[4].mxu1 %v1764_v40  ;;  %v3269_v40 = vpack.c.bf16 %v1937_v37, %v1933_v35  ;;  %v1958_v10 = vld [vmem:[%s4027_s20 + $0x1a0] sm:$0xff] }
 0x6c0   : > { %2133 = vmatprep.mubr.f32.mxu1 %v3707_v33 }
 0x792   : > { %v3093_v42 = vpop.f32.mrb[4].mxu1 }
 0x793   : > { %v1860_v43 = vadd.f32 %v3093_v42, %v2824_v41  ;;  %v1854_v16 = vpop.f32.mrb[5].mxu1  ;;  %v1932_v42 = vld [vmem:[%s4027_s20 + $0xd0] sm:$0xff] }
 0x794   : > { %v1855_v44 = vadd.f32 %v2824_v41, %v1854_v16  ;;  %v3239_v41 = vpack.c.bf16 %v1934_v39, %v1930_v38 }
 0x795   : > { %v1864_v45 = vadd.f32 %v1860_v43, %v4127_v12  ;;  %v1908_v12 = vld [vmem:[%s4027_s20 + $0x10] sm:$0xff] }
 0x796   : > { %v1863_v46 = vadd.f32 %v1855_v44, %v4107_v52  ;;  %v1915_v52 = vld [vmem:[%s4027_s20 + $0x48] sm:$0xff]  ;;  %v3259_v58 = vpack.c.bf16 %v1912_v57, %v1908_v12  ;;  %v1936_v43 = vld [vmem:[%s4027_s20 + $0xf0] sm:$0xff]  ;;  %v3275_v12 = vpack.c.bf16 %v1944_v55, %v1940_v54  ;;  %v2218_v55 = vld [vmem:[%s4029_s27] sm:$0xff] }
 0x797   : > { %1869 = vadd.xlane.f32.xlu0 %v1864_v45  ;;  %v3229_v62 = vpack.c.bf16 %v1919_v59, %v1915_v52  ;;  %v3271_v16 = vpack.c.bf16 %v1936_v43, %v1932_v42  ;;  %v1939_v44 = vld [vmem:[%s4027_s20 + $0x108] sm:$0xff]  ;;  %v1949_v52 = vld [vmem:[%s4027_s20 + $0x158] sm:$0xff] }
 0x798   : > { %1867 = vadd.xlane.f32.xlu1 %v1863_v46  ;;  %3260 = vmatpush1.bf16.msra.mxu1 %v3259_v58  ;;  %v1951_v57 = vld [vmem:[%s4027_s20 + $0x168] sm:$0xff]  ;;  %v1953_v58 = vld [vmem:[%s4027_s20 + $0x178] sm:$0xff] }
 0x799   : > { %3230 = vmatprep.subr.bf16.mxu0 %v3229_v62  ;;  %3262 = vmatprep.subr.bf16.mxu1 %v3261_v63  ;;  %v3245_v59 = vpack.c.bf16 %v1951_v57, %v1947_v56  ;;  %v3277_v60 = vpack.c.bf16 %v1953_v58, %v1949_v52  ;;  %v1950_v62 = vld [vmem:[%s4027_s20 + $0x160] sm:$0xff]  ;;  %v1948_v63 = vld [vmem:[%s4027_s20 + $0x150] sm:$0xff]  ;;  %v2267_v54 = vld [vmem:[%s4029_s27 + $0x188] sm:$0xff] }
 0x79a   : > { %3232 = vmatpush1.bf16.msra.mxu0 %v3231_v3  ;;  %v3247_v0 = vpack.c.bf16 %v1950_v62, %v1946_v61  ;;  %v1959_v3 = vld [vmem:[%s4027_s20 + $0x1a8] sm:$0xff]  ;;  %v3279_v4 = vpack.c.bf16 %v1952_v1, %v1948_v63  ;;  %v2250_v57 = vld [vmem:[%s4029_s27 + $0x100] sm:$0xff]  ;;  %v2268_v61 = vld [vmem:[%s4029_s27 + $0x190] sm:$0xff] }
 0x79b   : > { %3234 = vmatprep.subr.bf16.mxu0 %v3233_v8  ;;  %v3249_v5 = vpack.c.bf16 %v1959_v3, %v1955_v2  ;;  %v1954_v8 = vld [vmem:[%s4027_s20 + $0x180] sm:$0xff]  ;;  %v2219_v56 = vld [vmem:[%s4029_s27 + $0x8] sm:$0xff]  ;;  %v2269_v63 = vld [vmem:[%s4029_s27 + $0x198] sm:$0xff] }
 0x79c   : > { %3264 = vmatpush1.bf16.msra.mxu1 %v3263_v7  ;;  %v1961_v7 = vld [vmem:[%s4027_s20 + $0x1b8] sm:$0xff]  ;;  %v3251_v18 = vpack.c.bf16 %v1958_v10, %v1954_v8  ;;  %v2251_v52 = vld [vmem:[%s4029_s27 + $0x108] sm:$0xff]  ;;  %v3325_v2 = vpack.c.bf16 %v2269_v63, %v2268_v61  ;;  %v2246_v61 = vld [vmem:[%s4029_s27 + $0xe0] sm:$0xff] }
 0x79d   : > { %3266 = vmatprep.subr.bf16.mxu1 %v3265_v13  ;;  %v3281_v9 = vpack.c.bf16 %v1961_v7, %v1957_v6  ;;  %v1960_v13 = vld [vmem:[%s4027_s20 + $0x1b0] sm:$0xff]  ;;  %v3323_v58 = vpack.c.bf16 %v2251_v52, %v2250_v57  ;;  %v2221_v1 = vld [vmem:[%s4029_s27 + $0x18] sm:$0xff]  ;;  %v2238_v7 = vld [vmem:[%s4029_s27 + $0xa0] sm:$0xff] }
 0x79e   : > { %3236 = vmatpush1.bf16.msra.mxu0 %v3235_v21  ;;  %v1965_v21 = vld [vmem:[%s4027_s20 + $0x1d8] sm:$0xff]  ;;  %v2239_v8 = vld [vmem:[%s4029_s27 + $0xa8] sm:$0xff]  ;;  %v2278_v63 = vld [vmem:[%s4029_s27 + $0x1e0] sm:$0xff] }
 0x79f   : > { %3238 = vmatprep.subr.bf16.mxu0 %v3237_v36  ;;  %v3297_v10 = vpack.c.bf16 %v2239_v8, %v2238_v7  ;;  %v2263_v7 = vld [vmem:[%s4029_s27 + $0x168] sm:$0xff] }
 0x7a0   : > { %3268 = vmatpush1.bf16.msra.mxu1 %v3267_v22  ;;  %v3283_v22 = vpack.c.bf16 %v1960_v13, %v1956_v11  ;;  %v2271_v11 = vld [vmem:[%s4029_s27 + $0x1a8] sm:$0xff]  ;;  %v2222_v13 = vld [vmem:[%s4029_s27 + $0x20] sm:$0xff] }
 0x7a1   : > { %3270 = vmatprep.subr.bf16.mxu1 %v3269_v40 }
 0x7a2   : > { %3240 = vmatpush1.bf16.msra.mxu0 %v3239_v41 }
 0x7a4   : > { %3272 = vmatpush1.bf16.msra.mxu1 %v3271_v16  ;;  %v2825_v16 = vld [vmem:[%s4636_s4] ss:$0 sm:$0xff] }
 0x824   : > { %v1870_v23 = vpop.xlane.xlu0 %1869 }
 0x825   : > { %v1873_v24 = vmul.f32 0.0078125, %v1870_v23  ;;  %v1868_v25 = vpop.xlane.xlu1 %1867  ;;  %v3253_v23 = vpack.c.bf16 %v1967_v20, %v1963_v19 }
 0x826   : > { %v1872_v26 = vmul.f32 0.0078125, %v1868_v25  ;;  %v1962_v25 = vld [vmem:[%s4027_s20 + $0x1c0] sm:$0xff] }
 0x827   : > { %v4271_v27 = vsub.f32 %v1864_v45, %v1873_v24  ;;  %v1943_v45 = vld [vmem:[%s4027_s20 + $0x128] sm:$0xff]  ;;  %v1969_v24 = vld [vmem:[%s4027_s20 + $0x1f8] sm:$0xff] }
 0x828   : > { %v4273_v28 = vsub.f32 %v1863_v46, %v1872_v26  ;;  %v1941_v46 = vld [vmem:[%s4027_s20 + $0x118] sm:$0xff]  ;;  %v3241_v47 = vpack.c.bf16 %v1943_v45, %v1939_v44  ;;  %v1966_v26 = vld [vmem:[%s4027_s20 + $0x1e0] sm:$0xff] }
 0x829   : > { %v1877_v30 = vmul.f32 %v4271_v27, %v4271_v27  ;;  %v3273_v51 = vpack.c.bf16 %v1945_v48, %v1941_v46  ;;  %v3255_v34 = vpack.c.bf16 %v1966_v26, %v1962_v25  ;;  %v2826_v46 = vld [vmem:[%s4637_s1] ss:$0 sm:$0xff]  ;;  %v2241_v25 = vld [vmem:[%s4029_s27 + $0xb8] sm:$0xff] }
 0x82a   : > { %v1876_v31 = vmul.f32 %v4273_v28, %v4273_v28  ;;  %3242 = vmatprep.subr.bf16.mxu0 %v3241_v47  ;;  %v2272_v26 = vld [vmem:[%s4029_s27 + $0x1b0] sm:$0xff] }
 0x82b   : > { %1880 = vadd.xlane.f32.xlu1 %v1877_v30  ;;  %3274 = vmatprep.subr.bf16.mxu1 %v3273_v51  ;;  %v3285_v30 = vpack.c.bf16 %v1969_v24, %v1965_v21  ;;  %v2266_v51 = vld [vmem:[%s4029_s27 + $0x180] sm:$0xff]  ;;  %v2240_v24 = vld [vmem:[%s4029_s27 + $0xb0] sm:$0xff] }
 0x82c   : > { %1878 = vadd.xlane.f32.xlu0 %v1876_v31  ;;  %3244 = vmatpush1.bf16.msra.mxu0 %v3243_v53  ;;  %v1964_v31 = vld [vmem:[%s4027_s20 + $0x1d0] sm:$0xff]  ;;  %v2254_v21 = vld [vmem:[%s4029_s27 + $0x120] sm:$0xff] }
 0x82d   : > { %3276 = vmatpush1.bf16.msra.mxu1 %v3275_v12  ;;  %3246 = vmatprep.subr.bf16.mxu0 %v3245_v59  ;;  %v3287_v35 = vpack.c.bf16 %v1968_v32, %v1964_v31  ;;  %v3291_v12 = vpack.c.bf16 %v2219_v56, %v2218_v55  ;;  %v2236_v59 = vld [vmem:[%s4029_s27 + $0x90] sm:$0xff]  ;;  %v2273_v31 = vld [vmem:[%s4029_s27 + $0x1b8] sm:$0xff] }
 0x82e   : > { %3278 = vmatprep.subr.bf16.mxu1 %v3277_v60  ;;  %v2237_v60 = vld [vmem:[%s4029_s27 + $0x98] sm:$0xff]  ;;  %v2224_v32 = vld [vmem:[%s4029_s27 + $0x30] sm:$0xff] }
 0x82f   : > { %v3293_v62 = vpack.c.bf16 %v2237_v60, %v2236_v59  ;;  %v2277_v56 = vld [vmem:[%s4029_s27 + $0x1d8] sm:$0xff] }
 0x830   : > { %3248 = vmatpush1.bf16.msra.mxu0 %v3247_v0  ;;  %v2220_v0 = vld [vmem:[%s4029_s27 + $0x10] sm:$0xff]  ;;  %v2261_v59 = vld [vmem:[%s4029_s27 + $0x158] sm:$0xff] }
 0x831   : > { %3280 = vmatpush1.bf16.msra.mxu1 %v3279_v4  ;;  %3250 = vmatprep.subr.bf16.mxu0 %v3249_v5  ;;  %v3295_v3 = vpack.c.bf16 %v2221_v1, %v2220_v0  ;;  %v2252_v4 = vld [vmem:[%s4029_s27 + $0x110] sm:$0xff]  ;;  %v2253_v5 = vld [vmem:[%s4029_s27 + $0x118] sm:$0xff]  ;;  %v2279_v1 = vld [vmem:[%s4029_s27 + $0x1e8] sm:$0xff] }
 0x832   : > { %3282 = vmatprep.subr.bf16.mxu1 %v3281_v9  ;;  %v3327_v6 = vpack.c.bf16 %v2253_v5, %v2252_v4  ;;  %v2270_v9 = vld [vmem:[%s4029_s27 + $0x1a0] sm:$0xff]  ;;  %v3345_v4 = vpack.c.bf16 %v2279_v1, %v2278_v63 }
 0x833   : > { %v3329_v19 = vpack.c.bf16 %v2271_v11, %v2270_v9  ;;  %v2248_v9 = vld [vmem:[%s4029_s27 + $0xf0] sm:$0xff] }
 0x834   : > { %3252 = vmatpush1.bf16.msra.mxu0 %v3251_v18  ;;  %v2223_v18 = vld [vmem:[%s4029_s27 + $0x28] sm:$0xff]  ;;  %v2280_v11 = vld [vmem:[%s4029_s27 + $0x1f0] sm:$0xff] }
 0x835   : > { %3284 = vmatpush1.bf16.msra.mxu1 %v3283_v22  ;;  %3254 = vmatprep.subr.bf16.mxu0 %v3253_v23  ;;  %v3299_v20 = vpack.c.bf16 %v2223_v18, %v2222_v13  ;;  %v2255_v22 = vld [vmem:[%s4029_s27 + $0x128] sm:$0xff]  ;;  %v2281_v18 = vld [vmem:[%s4029_s27 + $0x1f8] sm:$0xff] }
 0x836   : > { %3286 = vmatprep.subr.bf16.mxu1 %v3285_v30  ;;  %v3331_v23 = vpack.c.bf16 %v2255_v22, %v2254_v21  ;;  %v3301_v30 = vpack.c.bf16 %v2241_v25, %v2240_v24  ;;  %v3349_v21 = vpack.c.bf16 %v2281_v18, %v2280_v11  ;;  %v2265_v24 = vld [vmem:[%s4029_s27 + $0x178] sm:$0xff] }
 0x838   : > { %3256 = vmatpush1.bf16.msra.mxu0 %v3255_v34  ;;  %v2225_v34 = vld [vmem:[%s4029_s27 + $0x38] sm:$0xff] }
 0x839   : > { %3288 = vmatpush1.bf16.msra.mxu1 %v3287_v35  ;;  %v3333_v35 = vpack.c.bf16 %v2273_v31, %v2272_v26  ;;  %v1970_v26 = vld [vmem:[%s4061_s12] sm:$0xf] }
 0x83a   : > { %v1975_v31 = vrot.slane %v1970_v26, %v920_v15 }
 0x8b8   : > { %v1881_v36 = vpop.xlane.xlu1 %1880 }
 0x8b9   : > { %v1883_v37 = vmul.f32 0.0078125, %v1881_v36  ;;  %v1879_v38 = vpop.xlane.xlu0 %1878  ;;  %v3303_v36 = vpack.c.bf16 %v2225_v34, %v2224_v32  ;;  %v1983_v32 = vrot.slane %v1970_v26, %v928_v29  ;;  %v1979_v34 = vrot.slane %v1970_v26, %v924_v17 }
 0x8ba   : > { %v1882_v39 = vmul.f32 0.0078125, %v1879_v38  ;;  %v2257_v38 = vld [vmem:[%s4029_s27 + $0x138] sm:$0xff] }
 0x8bb   : > { %v1885_v40 = vadd.f32 1e-05, %v1883_v37  ;;  %v2256_v37 = vld [vmem:[%s4029_s27 + $0x130] sm:$0xff] }
 0x8bc   : > { %v1884_v41 = vadd.f32 1e-05, %v1882_v39  ;;  %v3335_v39 = vpack.c.bf16 %v2257_v38, %v2256_v37 }
 0x8bd   : > { %3479 = vrsqrt.f32 %v1885_v40  ;;  %v2242_v40 = vld [vmem:[%s4029_s27 + $0xc0] sm:$0xff] }
 0x8be   : > { %3481 = vrsqrt.f32 %v1884_v41  ;;  %v2243_v41 = vld [vmem:[%s4029_s27 + $0xc8] sm:$0xff] }
 0x8c7   : > { %v3480_v42 = vpop.eup %3479 }
 0x8c8   : > { %v3482_v43 = vpop.eup %3481  ;;  %v1889_v45 = vmul.f32 %v3480_v42, %v4271_v27  ;;  %v2274_v42 = vld [vmem:[%s4029_s27 + $0x1c0] sm:$0xff] }
 0x8c9   : > { %v1888_v44 = vmul.f32 %v3482_v43, %v4273_v28  ;;  %v2234_v28 = vld [vmem:[%s4029_s27 + $0x80] sm:$0xff]  ;;  %v3305_v43 = vpack.c.bf16 %v2243_v41, %v2242_v40 }
 0x8ca   : > { %v1897_v49 = vmul.f32 %v2825_v16, %v1889_v45  ;;  %v3289_v53 = vpack.c.bf16 %v2235_v50, %v2234_v28  ;;  %v2227_v45 = vld [vmem:[%s4029_s27 + $0x48] sm:$0xff] }
 0x8cb   : > { %v1896_v47 = vmul.f32 %v2825_v16, %v1888_v44  ;;  %v2275_v16 = vld [vmem:[%s4029_s27 + $0x1c8] sm:$0xff]  ;;  %v2226_v44 = vld [vmem:[%s4029_s27 + $0x40] sm:$0xff] }
 0x8cc   : > { %v4337_v27 = vadd.f32 %v2826_v46, %v1897_v49  ;;  %3290 = vmatprep.subr.bf16.mxu0 %v3289_v53  ;;  %v2258_v49 = vld [vmem:[%s4029_s27 + $0x140] sm:$0xff]  ;;  %v2259_v28 = vld [vmem:[%s4029_s27 + $0x148] sm:$0xff]  ;;  %v2245_v53 = vld [vmem:[%s4029_s27 + $0xd8] sm:$0xff] }
 0x8cd   : > { %v4331_v48 = vadd.f32 %v2826_v46, %v1896_v47  ;;  %v3337_v46 = vpack.c.bf16 %v2275_v16, %v2274_v42  ;;  %v3307_v47 = vpack.c.bf16 %v2227_v45, %v2226_v44  ;;  %v3339_v50 = vpack.c.bf16 %v2259_v28, %v2258_v49 }
 0x8cf   : > { %2057 = vmatmul.mubr.f32.vlgmr.msra.gmra.mrb[18].mxu0 %v4331_v48  ;;  %2134 = vmatmul.mubr.f32.vlgmr.msra.gmra.mrb[6].mxu1 %v4331_v48 }
 0x8d0   : > { %2062 = vmatprep.mubr.f32.mxu0 %v3707_v33  ;;  %2139 = vmatprep.mubr.f32.mxu1 %v3707_v33  ;;  %v3321_v33 = vpack.c.bf16 %v2267_v54, %v2266_v51  ;;  %v2244_v51 = vld [vmem:[%s4029_s27 + $0xd0] sm:$0xff] }
 0x8d1   : > { %3292 = vmatpush3.bf16.msra.mxu0 %v3291_v12  ;;  %v2276_v54 = vld [vmem:[%s4029_s27 + $0x1d0] sm:$0xff]  ;;  %v3309_v55 = vpack.c.bf16 %v2245_v53, %v2244_v51  ;;  %v2229_v12 = vld [vmem:[%s4029_s27 + $0x58] sm:$0xff] }
 0x8d2   : > { %3322 = vmatprep.subr.bf16.mxu1 %v3321_v33  ;;  %3294 = vmatprep.subr.bf16.mxu0 %v3293_v62  ;;  %v2228_v33 = vld [vmem:[%s4029_s27 + $0x50] sm:$0xff]  ;;  %v3341_v57 = vpack.c.bf16 %v2277_v56, %v2276_v54  ;;  %v2247_v62 = vld [vmem:[%s4029_s27 + $0xe8] sm:$0xff] }
 0x8d3   : > { %2063 = vmatmul.mubr.f32.gmra.mrb[20].mxu0 %v4337_v27  ;;  %2140 = vmatmul.mubr.f32.gmra.mrb[8].mxu1 %v4337_v27  ;;  %v3311_v52 = vpack.c.bf16 %v2229_v12, %v2228_v33  ;;  %v3313_v0 = vpack.c.bf16 %v2247_v62, %v2246_v61 }
 0x8d4   : > { %3324 = vmatpush3.bf16.msra.mxu1 %v3323_v58  ;;  %v2260_v58 = vld [vmem:[%s4029_s27 + $0x150] sm:$0xff] }
 0x8d5   : > { %3326 = vmatprep.subr.bf16.mxu1 %v3325_v2  ;;  %3296 = vmatpush3.bf16.msra.mxu0 %v3295_v3  ;;  %v3343_v60 = vpack.c.bf16 %v2261_v59, %v2260_v58  ;;  %v2230_v2 = vld [vmem:[%s4029_s27 + $0x60] sm:$0xff]  ;;  %v2231_v3 = vld [vmem:[%s4029_s27 + $0x68] sm:$0xff] }
 0x8d6   : > { %3298 = vmatprep.subr.bf16.mxu0 %v3297_v10  ;;  %v3315_v5 = vpack.c.bf16 %v2231_v3, %v2230_v2  ;;  %v2249_v10 = vld [vmem:[%s4029_s27 + $0xf8] sm:$0xff] }
 0x8d7   : > { %v3317_v13 = vpack.c.bf16 %v2249_v10, %v2248_v9 }
 0x8d8   : > { %3328 = vmatpush3.bf16.msra.mxu1 %v3327_v6  ;;  %v2262_v6 = vld [vmem:[%s4029_s27 + $0x160] sm:$0xff] }
 0x8d9   : > { %3330 = vmatprep.subr.bf16.mxu1 %v3329_v19  ;;  %3300 = vmatpush3.bf16.msra.mxu0 %v3299_v20  ;;  %v3347_v8 = vpack.c.bf16 %v2263_v7, %v2262_v6  ;;  %v2232_v19 = vld [vmem:[%s4029_s27 + $0x70] sm:$0xff]  ;;  %v2233_v20 = vld [vmem:[%s4029_s27 + $0x78] sm:$0xff] }
 0x8da   : > { %3302 = vmatprep.subr.bf16.mxu0 %v3301_v30  ;;  %v3319_v22 = vpack.c.bf16 %v2233_v20, %v2232_v19  ;;  %v1986_v30 = vsub.s32 3, %v4132_v14 }
 0x8dc   : > { %3332 = vmatpush3.bf16.msra.mxu1 %v3331_v23  ;;  %v2264_v23 = vld [vmem:[%s4029_s27 + $0x170] sm:$0xff] }
 0x8dd   : > { %3334 = vmatprep.subr.bf16.mxu1 %v3333_v35  ;;  %3304 = vmatpush3.bf16.msra.mxu0 %v3303_v36  ;;  %v3351_v25 = vpack.c.bf16 %v2265_v24, %v2264_v23  ;;  %v1987_v35 = vrot.slane %v1970_v26, %v1986_v30 }
 0x8de   : > { %3306 = vmatprep.subr.bf16.mxu0 %v3305_v43 }
 0x8e0   : > { %3336 = vmatpush3.bf16.msra.mxu1 %v3335_v39 }
 0x8e1   : > { %3338 = vmatprep.subr.bf16.mxu1 %v3337_v46  ;;  %3308 = vmatpush3.bf16.msra.mxu0 %v3307_v47 }
 0x8e2   : > { %3310 = vmatprep.subr.bf16.mxu0 %v3309_v55 }
 0x8e4   : > { %3340 = vmatpush3.bf16.msra.mxu1 %v3339_v50 }
 0x8e5   : > { %3342 = vmatprep.subr.bf16.mxu1 %v3341_v57  ;;  %3312 = vmatpush3.bf16.msra.mxu0 %v3311_v52 }
 0x8e6   : > { %3314 = vmatprep.subr.bf16.mxu0 %v3313_v0 }
 0x8e8   : > { %3344 = vmatpush3.bf16.msra.mxu1 %v3343_v60 }
 0x8e9   : > { %3346 = vmatprep.subr.bf16.mxu1 %v3345_v4  ;;  %3316 = vmatpush3.bf16.msra.mxu0 %v3315_v5 }
 0x8ea   : > { %3318 = vmatprep.subr.bf16.mxu0 %v3317_v13 }
 0x8ec   : > { %3348 = vmatpush3.bf16.msra.mxu1 %v3347_v8 }
 0x8ed   : > { %3350 = vmatprep.subr.bf16.mxu1 %v3349_v21  ;;  %3320 = vmatpush3.bf16.msra.mxu0 %v3319_v22 }
 0x8f0   : > { %3352 = vmatpush3.bf16.msra.mxu1 %v3351_v25 }
 0x9a2   : > { %v2058_v36 = vpop.f32.mrb[18].mxu0  ;;  %v2135_v37 = vpop.f32.mrb[6].mxu1 }
 0x9a3   : > { %v4413_v38 = vadd.f32 %v2058_v36, %v1975_v31  ;;  %v4415_v39 = vadd.f32 %v2135_v37, %v1983_v32  ;;  %v2060_v40 = vpop.f32.mrb[19].mxu0  ;;  %v2137_v41 = vpop.f32.mrb[7].mxu1 }
 0x9a4   : > { %v4417_v42 = vadd.f32 %v2060_v40, %v1979_v34  ;;  %v4419_v43 = vadd.f32 %v2137_v41, %v1987_v35 }
 0x9a5   : > { %v2146_v15 = vmul.f32 %v4413_v38, %v4413_v38  ;;  %v2148_v14 = vmul.f32 %v4415_v39, %v4415_v39 }
 0x9a6   : > { %v2147_v17 = vmul.f32 %v4417_v42, %v4417_v42  ;;  %v2149_v29 = vmul.f32 %v4419_v43, %v4419_v43  ;;  %v2064_v16 = vpop.f32.mrb[20].mxu0  ;;  %v2141_v44 = vpop.f32.mrb[8].mxu1 }
 0x9a7   : > { %v2154_v45 = vmul.f32 %v2146_v15, %v4413_v38  ;;  %v2156_v46 = vmul.f32 %v2148_v14, %v4415_v39  ;;  %v4431_v47 = vadd.f32 %v2064_v16, %v1975_v31  ;;  %v4433_v49 = vadd.f32 %v2141_v44, %v1983_v32  ;;  %v2066_v28 = vpop.f32.mrb[21].mxu0  ;;  %v2143_v50 = vpop.f32.mrb[9].mxu1 }
 0x9a8   : > { %v2155_v51 = vmul.f32 %v2147_v17, %v4417_v42  ;;  %v2157_v53 = vmul.f32 %v2149_v29, %v4419_v43  ;;  %v4437_v54 = vadd.f32 %v2066_v28, %v1979_v34  ;;  %v4439_v55 = vadd.f32 %v2143_v50, %v1987_v35 }
 0x9a9   : > { %v2162_v56 = vmul.f32 0.044715, %v2154_v45  ;;  %v2164_v33 = vmul.f32 0.044715, %v2156_v46  ;;  %v2150_v12 = vmul.f32 %v4431_v47, %v4431_v47  ;;  %v2152_v57 = vmul.f32 %v4433_v49, %v4433_v49 }
 0x9aa   : > { %v2163_v52 = vmul.f32 0.044715, %v2155_v51  ;;  %v2165_v58 = vmul.f32 0.044715, %v2157_v53  ;;  %v2151_v59 = vmul.f32 %v4437_v54, %v4437_v54  ;;  %v2153_v60 = vmul.f32 %v4439_v55, %v4439_v55 }
 0x9ab   : > { %v2170_v61 = vadd.f32 %v2162_v56, %v4413_v38  ;;  %v2172_v62 = vadd.f32 %v2164_v33, %v4415_v39  ;;  %v2158_v63 = vmul.f32 %v2150_v12, %v4431_v47  ;;  %v2160_v0 = vmul.f32 %v2152_v57, %v4433_v49 }
 0x9ac   : > { %v2171_v1 = vadd.f32 %v2163_v52, %v4417_v42  ;;  %v2173_v2 = vadd.f32 %v2165_v58, %v4419_v43  ;;  %v2159_v3 = vmul.f32 %v2151_v59, %v4437_v54  ;;  %v2161_v4 = vmul.f32 %v2153_v60, %v4439_v55 }
 0x9ad   : > { %v2178_v5 = vmul.f32 0.7978846, %v2170_v61  ;;  %v2180_v6 = vmul.f32 0.7978846, %v2172_v62  ;;  %v2166_v7 = vmul.f32 0.044715, %v2158_v63 }
 0x9ae   : > { %v2179_v8 = vmul.f32 0.7978846, %v2171_v1  ;;  %v2181_v9 = vmul.f32 0.7978846, %v2173_v2  ;;  %v2168_v10 = vmul.f32 0.044715, %v2160_v0 }
 0x9af   : > { %3483 = vtanh.f32 %v2178_v5  ;;  %v2174_v11 = vadd.f32 %v2166_v7, %v4431_v47  ;;  %v2167_v13 = vmul.f32 0.044715, %v2159_v3  ;;  %v2169_v18 = vmul.f32 0.044715, %v2161_v4  ;;  %v2827_v61 = vld [vmem:[%s810_s22] ss:$0 sm:$0xff] }
 0x9b0   : > { %3485 = vtanh.f32 %v2180_v6  ;;  %v2176_v19 = vadd.f32 %v2168_v10, %v4433_v49 }
 0x9b1   : > { %v2182_v20 = vmul.f32 0.7978846, %v2174_v11  ;;  %v2175_v21 = vadd.f32 %v2167_v13, %v4437_v54  ;;  %v2177_v22 = vadd.f32 %v2169_v18, %v4439_v55  ;;  %3487 = vtanh.f32 %v2179_v8 }
 0x9b2   : > { %v2184_v23 = vmul.f32 0.7978846, %v2176_v19  ;;  %3489 = vtanh.f32 %v2181_v9 }
 0x9b3   : > { %v2183_v24 = vmul.f32 0.7978846, %v2175_v21  ;;  %v2185_v25 = vmul.f32 0.7978846, %v2177_v22  ;;  %3491 = vtanh.f32 %v2182_v20 }
 0x9b4   : > { %3493 = vtanh.f32 %v2184_v23 }
 0x9b5   : > { %3495 = vtanh.f32 %v2183_v24 }
 0x9b6   : > { %3497 = vtanh.f32 %v2185_v25 }
 0x9b9   : > { %v3484_v26 = vpop.eup %3483 }
 0x9ba   : > { %v3486_v30 = vpop.eup %3485  ;;  %v2194_v31 = vadd.f32 1.0, %v3484_v26 }
 0x9bb   : > { %v3488_v32 = vpop.eup %3487  ;;  %v2196_v34 = vadd.f32 1.0, %v3486_v30 }
 0x9bc   : > { %v3490_v35 = vpop.eup %3489  ;;  %v2195_v36 = vadd.f32 1.0, %v3488_v32  ;;  %v2202_v40 = vmul.f32 0.5, %v2194_v31  ;;  %v2828_v31 = vld [vmem:[%s813_s17] ss:$0 sm:$0xff]  ;;  %s4639_s17 = sld [smem:[#allocation28_spill]] (!%p2830_p5) }
 0x9bd   : > { %v3492_v37 = vpop.eup %3491  ;;  %v2197_v41 = vadd.f32 1.0, %v3490_v35  ;;  %v2204_v14 = vmul.f32 0.5, %v2196_v34  ;;  %v2829_v34 = vld [vmem:[%s816_s2] ss:$0 sm:$0xff] }
 0x9be   : > { %v3494_v15 = vpop.eup %3493  ;;  %v2203_v17 = vmul.f32 0.5, %v2195_v36  ;;  %v2198_v29 = vadd.f32 1.0, %v3492_v37  ;;  %v2210_v51 = vmul.f32 %v2202_v40, %v4413_v38 }
 0x9bf   : > { %v3496_v16 = vpop.eup %3495  ;;  %v2205_v44 = vmul.f32 0.5, %v2197_v41  ;;  %v2200_v45 = vadd.f32 1.0, %v3494_v15  ;;  %v2212_v12 = vmul.f32 %v2204_v14, %v4415_v39 }
 0x9c0   : > { %v3498_v46 = vpop.eup %3497  ;;  %v2211_v28 = vmul.f32 %v2203_v17, %v4417_v42  ;;  %v2199_v50 = vadd.f32 1.0, %v3496_v16  ;;  %v2206_v33 = vmul.f32 0.5, %v2198_v29  ;;  %v3710_v16 = vmov (!%p2830_p5), 0.0|0.0  }
 0x9c1   : > { %v2213_v53 = vmul.f32 %v2205_v44, %v4419_v43  ;;  %v2201_v56 = vadd.f32 1.0, %v3498_v46  ;;  %v2208_v52 = vmul.f32 0.5, %v2200_v45  ;;  %3353 = vmatprep.subr.bf16.mxu0 (!%p2830_p5), %v3710_v16  ;;  %v3712_v46 = vmov (!%p2830_p5), 0.0  }
 0x9c2   : > { %2353 = vmatprep.mubr.f32.mxu0 %v2211_v28  ;;  %v2207_v57 = vmul.f32 0.5, %v2199_v50  ;;  %v2214_v38 = vmul.f32 %v2206_v33, %v4431_v47  ;;  %v2487_v14 = vld [vmem:[%s4639_s17] sm:$0xff] (!%p2830_p5)  ;;  %v2488_v17 = vld [vmem:[%s4639_s17 + $0x8] sm:$0xff] (!%p2830_p5)  ;;  %v2489_v29 = vld [vmem:[%s4639_s17 + $0x10] sm:$0xff] (!%p2830_p5) }
 0x9c3   : > { %2428 = vmatprep.mubr.f32.mxu1 %v2213_v53  ;;  %2354 = vmatmul.mubr.f32.vlgmr.msra.gmra.mrb[22].mxu0 %v2210_v51  ;;  %v2209_v58 = vmul.f32 0.5, %v2201_v56  ;;  %v2216_v43 = vmul.f32 %v2208_v52, %v4433_v49  ;;  %v3354_v44 = vpack.c.bf16 (!%p2830_p5), %v2488_v17, %v2487_v14  ;;  %v2490_v45 = vld [vmem:[%s4639_s17 + $0x18] sm:$0xff] (!%p2830_p5)  ;;  %v2491_v50 = vld [vmem:[%s4639_s17 + $0x20] sm:$0xff] (!%p2830_p5)  ;;  %v2492_v51 = vld [vmem:[%s4639_s17 + $0x28] sm:$0xff] (!%p2830_p5) }
 0x9c4   : > { %2429 = vmatmul.mubr.f32.vlgmr.msra.gmra.mrb[10].mxu1 %v2212_v12  ;;  %v2215_v59 = vmul.f32 %v2207_v57, %v4437_v54  ;;  %v3357_v28 = vpack.c.bf16 (!%p2830_p5), %v2490_v45, %v2489_v29  ;;  %v3360_v53 = vpack.c.bf16 (!%p2830_p5), %v2492_v51, %v2491_v50  ;;  %v2493_v56 = vld [vmem:[%s4639_s17 + $0x30] sm:$0xff] (!%p2830_p5)  ;;  %v2494_v33 = vld [vmem:[%s4639_s17 + $0x38] sm:$0xff] (!%p2830_p5)  ;;  %v2495_v57 = vld [vmem:[%s4639_s17 + $0x40] sm:$0xff] (!%p2830_p5) }
 0x9c5   : > { %v2217_v42 = vmul.f32 %v2209_v58, %v4439_v55  ;;  %3355 = vmatpush3.bf16.msra.mxu0 (!%p2830_p5), %v3354_v44  ;;  %v3363_v12 = vpack.c.bf16 (!%p2830_p5), %v2494_v33, %v2493_v56  ;;  %v2496_v52 = vld [vmem:[%s4639_s17 + $0x48] sm:$0xff] (!%p2830_p5) }
 0x9c6   : > { %2358 = vmatprep.mubr.f32.mxu0 %v2215_v59  ;;  %3356 = vmatprep.subr.bf16.mxu0 (!%p2830_p5), %v3710_v16  ;;  %v3366_v58 = vpack.c.bf16 (!%p2830_p5), %v2496_v52, %v2495_v57  ;;  %v2497_v59 = vld [vmem:[%s4639_s17 + $0x50] sm:$0xff] (!%p2830_p5) }
 0x9c7   : > { %2433 = vmatprep.mubr.f32.mxu1 %v2217_v42  ;;  %2359 = vmatmul.mubr.f32.gmra.mrb[24].mxu0 %v2214_v38  ;;  %v2498_v42 = vld [vmem:[%s4639_s17 + $0x58] sm:$0xff] (!%p2830_p5) }
 0x9c8   : > { %2434 = vmatmul.mubr.f32.gmra.mrb[12].mxu1 %v2216_v43  ;;  %3126 = vmatprep.mubr.msk.f32.mxu0 (!%p2830_p5), %vm3711_vm3, %v3712_v46  ;;  %v3369_v38 = vpack.c.bf16 (!%p2830_p5), %v2498_v42, %v2497_v59  ;;  %v2499_v43 = vld [vmem:[%s4639_s17 + $0x60] sm:$0xff] (!%p2830_p5) }
 0x9c9   : > { %3358 = vmatpush3.bf16.msra.mxu0 (!%p2830_p5), %v3357_v28 }
 0x9ca   : > { %3359 = vmatprep.subr.bf16.mxu0 (!%p2830_p5), %v3710_v16 }
 0x9cd   : > { %3361 = vmatpush3.bf16.msra.mxu0 (!%p2830_p5), %v3360_v53 }
 0x9ce   : > { %3362 = vmatprep.subr.bf16.mxu0 (!%p2830_p5), %v3710_v16 }
 0x9d1   : > { %3364 = vmatpush3.bf16.msra.mxu0 (!%p2830_p5), %v3363_v12 }
 0x9d2   : > { %3365 = vmatprep.subr.bf16.mxu0 (!%p2830_p5), %v3710_v16 }
 0x9d5   : > { %3367 = vmatpush3.bf16.msra.mxu0 (!%p2830_p5), %v3366_v58 }
 0x9d6   : > { %3368 = vmatprep.subr.bf16.mxu0 (!%p2830_p5), %v3710_v16 }
 0x9d9   : > { %3370 = vmatpush3.bf16.msra.mxu0 (!%p2830_p5), %v3369_v38 }
 0x9da   : > { %3371 = vmatprep.subr.bf16.mxu0 (!%p2830_p5), %v3710_v16 }
 0xa96   : > { %v2923_v39 = vpop.f32.mrb[22].mxu0 }
 0xa97   : > { %v2961_v60 = vpop.f32.mrb[10].mxu1  ;;  %v2924_v62 = vpop.f32.mrb[23].mxu0 }
 0xa98   : > { %v2925_v63 = vadd.f32 %v2924_v62, %v2923_v39  ;;  %v2962_v54 = vpop.f32.mrb[11].mxu1  ;;  %v2500_v39 = vld [vmem:[%s4639_s17 + $0x68] sm:$0xff] (!%p2830_p5)  ;;  %v2502_v62 = vld [vmem:[%s4639_s17 + $0x78] sm:$0xff] (!%p2830_p5) }
 0xa99   : > { %v2963_v0 = vadd.f32 %v2962_v54, %v2961_v60  ;;  %v3372_v60 = vpack.c.bf16 (!%p2830_p5), %v2500_v39, %v2499_v43 }
 0xa9a   : > { %v2356_v55 = vadd.f32 %v2925_v63, %v2827_v61  ;;  %v2926_v1 = vpop.f32.mrb[24].mxu0 }
 0xa9b   : > { %v2964_v47 = vpop.f32.mrb[12].mxu1  ;;  %v2927_v2 = vpop.f32.mrb[25].mxu0  ;;  %3373 = vmatpush3.bf16.msra.mxu0 (!%p2830_p5), %v3372_v60 }
 0xa9c   : > { %v2431_v3 = vadd.f32 %v2963_v0, %v2356_v55  ;;  %v2928_v49 = vadd.f32 %v2927_v2, %v2926_v1  ;;  %v2965_v4 = vpop.f32.mrb[13].mxu1  ;;  %3374 = vmatprep.subr.bf16.mxu0 (!%p2830_p5), %v3710_v16  ;;  %v2831_v55 = vld [vmem:[%s4640_s3] ss:$0 sm:$0xff] (!%p2830_p5) }
 0xa9d   : > { %v2966_v5 = vadd.f32 %v2965_v4, %v2964_v47 }
 0xa9e   : > { %v2361_v6 = vadd.f32 %v2928_v49, %v2827_v61  ;;  %v2439_v7 = vadd.f32 %v2431_v3, %v4331_v48  ;;  %v2501_v61 = vld [vmem:[%s4639_s17 + $0x70] sm:$0xff] (!%p2830_p5) }
 0xa9f   : > { %v3375_v63 = vpack.c.bf16 (!%p2830_p5), %v2502_v62, %v2501_v61 }
 0xaa0   : > { %v2436_v8 = vadd.f32 %v2966_v5, %v2361_v6  ;;  %2443 = vadd.xlane.f32.xlu0 %v2439_v7 }
 0xaa1   : > { %3376 = vmatpush3.bf16.msra.mxu0 (!%p2830_p5), %v3375_v63 }
 0xaa2   : > { %v2440_v9 = vadd.f32 %v2436_v8, %v4337_v27 }
 0xaa4   : > { %2445 = vadd.xlane.f32.xlu1 %v2440_v9 }
 0xb2d   : > { %v2444_v10 = vpop.xlane.xlu0 %2443 }
 0xb2e   : > { %v2447_v11 = vmul.f32 0.0078125, %v2444_v10 }
 0xb30   : > { %v2449_v13 = vsub.f32 %v2439_v7, %v2447_v11 }
 0xb31   : > { %v2446_v18 = vpop.xlane.xlu1 %2445 }
 0xb32   : > { %v2448_v19 = vmul.f32 0.0078125, %v2446_v18  ;;  %v2451_v20 = vmul.f32 %v2449_v13, %v2449_v13 }
 0xb34   : > { %v2450_v21 = vsub.f32 %v2440_v9, %v2448_v19  ;;  %2453 = vadd.xlane.f32.xlu0 %v2451_v20 }
 0xb36   : > { %v2452_v22 = vmul.f32 %v2450_v21, %v2450_v21 }
 0xb38   : > { %2455 = vadd.xlane.f32.xlu1 %v2452_v22 }
 0xbc1   : > { %v2454_v23 = vpop.xlane.xlu0 %2453 }
 0xbc2   : > { %v2457_v24 = vmul.f32 0.0078125, %v2454_v23 }
 0xbc4   : > { %v2459_v48 = vadd.f32 1e-05, %v2457_v24 }
 0xbc5   : > { %v2456_v25 = vpop.xlane.xlu1 %2455 }
 0xbc6   : > { %3499 = vrsqrt.f32 %v2459_v48  ;;  %v2458_v26 = vmul.f32 0.0078125, %v2456_v25 }
 0xbc8   : > { %v2460_v27 = vadd.f32 1e-05, %v2458_v26 }
 0xbca   : > { %3501 = vrsqrt.f32 %v2460_v27 }
 0xbd0   : > { %v3500_v30 = vpop.eup %3499 }
 0xbd1   : > { %v2463_v32 = vmul.f32 %v3500_v30, %v2449_v13 }
 0xbd3   : > { %v2471_v35 = vmul.f32 %v2828_v31, %v2463_v32 }
 0xbd4   : > { %v3502_v36 = vpop.eup %3501 }
 0xbd5   : > { %v2479_v37 = vadd.f32 %v2829_v34, %v2471_v35  ;;  %v2464_v40 = vmul.f32 %v3502_v36, %v2450_v21  ;;  %2486 = sbr.rel (%p2830_p5) target bundleno = 3253 (0xcb5), region = 116 }
 0xbd7   : > { %2481 = vst [vmem:[#allocation2] sm:$0xff] %v2479_v37  ;;  %v2472_v41 = vmul.f32 %v2828_v31, %v2464_v40 }
 0xbd9   : > { %v2480_v15 = vadd.f32 %v2829_v34, %v2472_v41 }
 0xbdb   : > { %2482 = vst [vmem:[#allocation2 + $0x8] sm:$0xff] %v2480_v15  ;;  %v2512_v54 = vrot.slane (!%p2830_p5), %v2480_v15, 7 }
 0xbdd   : > { %v2514_v0 = vsel %vm2513_vm4, %v2512_v54, %v2479_v37 }
 0xbde   : > { %3127 = vmatmul.mubr.f32.vlgmr.msra.gmra.mrb[0].mxu0 %v2514_v0 }
 0xcb1   : > { %v2582_v1 = vpop.f32.mrb[0].mxu0 }
 0xcb2   : > { %v2583_v47 = vadd.f32 %v2831_v55, %v2582_v1  ;;  %v3128_v2 = vpop.f32.mrb[1].mxu0 }
 0xcb4   : > { %2587 = vst.msk [vmem:[#allocation11] sm:$0x3] %vm2586_vm5, %v2583_v47 }
 0xcb5 PF: > { %p3407_p6 = scmp.eq.s32.totalorder %s3828_s0, 1  ;;  %s3713_s29 = smov [#allocation11]  }
 0xcb6   : > { %s2595_s25 = sshll.u32 %s3713_s29, 4  ;;  %s2596_s25 = int_to_ptr.vmem [resolvable:$true] %s2595_s25 }
 0xcb7   : > { %s3623_s23 = scalar_lea.vmem %s2596_s25, 32  ;;  %p3630_p13 = scmp.lt.s32.totalorder %s2596_s25, %s2596_s25 }
 0xcb8   : > { %p3624_p1 = scmp.ne.s32.totalorder %s2596_s25, %s3623_s23  ;;  %p3631_p9 = scmp.lt.s32.totalorder %s3623_s23, %s3623_s23 }
 0xcba   : > { %p3625_p4 = pnand %p3624_p1, %p3407_p6  ;;  %p3632_p0 = por %p3631_p9, %p3630_p13 }
 0xcbc   : > { %p3626_p11 = pneg %p3625_p4 }
 0xcbe   : > { %p3633_p12 = pnand %p3632_p0, %p3626_p11 }
 0xcc0   : > { %3636 = shalt.err (!%p3633_p12)
}
 0xcc1   : > { %s4641_s30 = sld [smem:[#allocation30_spill]] }
 0xcc7   : > { %s4642_s19 = smov %s4641_s30  ;;  %s3637_s26 = scalar_lea.hbm %s4641_s30, 32 }
 0xcc8   : > { %p3638_p2 = scmp.ne.s32.totalorder %s4642_s19, %s3637_s26  ;;  %p3643_p8 = scmp.lt.u32.totalorder %s3637_s26, %s4642_s19 }
 0xcca   : > { %p3639_p10 = pnand %p3638_p2, %p3407_p6 }
 0xccc   : > { %p3640_p7 = pneg %p3639_p10 }
 0xcce   : > { %p3645_p3 = pnand %p3643_p8, %p3640_p7 }
 0xcd0   : > { %3648 = shalt.err (!%p3645_p3)
}
 0xcd1   : > { %3390 = dma.vmem_to_hbm [thread:$0]  (%p3407_p6), %s2596_s25, 32, %s4642_s19, [#allocation5]  }
 0xcd2   : > { %3678 = dma.done.wait (%p3407_p6), [#allocation5], 32  }
 0xcd3   : > { %3680 = vsyncadd (%p3407_p6), [#allocation5], 4294967264 }
 0xcd4 PF: > { %s4643_s30 = sld [smem:[#allocation17_spill]]  ;;  %s4644_s1 = sld [smem:[#allocation16_spill]] }
 0xcd5   : > { %s4645_s29 = sld [smem:[#allocation18_spill]]  ;;  %s4646_s27 = smov %s3687_s28 }
 0xcda   : > { %p35_p5 = scmp.ge.s32.totalorder %s4643_s30, 4   ;;  %s4647_s28 = smov %s4644_s1 }
 0xcdc   :  { %37 = sbr.rel (!%p35_p5) target bundleno = 21 (0x15), region = 198 }
 0xce3   :  { %2608 = vsyncpa [#allocation4], 1 }
 0xce4   :  { %2610 = vsyncpa [#allocation4 + $0x1], 1 }
 0xce5   :  { %2611 = vsyncpa [#allocation7], 1 }
 0xce6   :  { %2613 = vsyncpa [#allocation7 + $0x1], 1 }
 0xce7   :  { %2614 = vsyncpa [#allocation10], 1 }
 0xce8   :  { %2616 = vsyncpa [#allocation10 + $0x1], 1 }
 0xce9   :  { %2617 = vsyncpa [#allocation5], 1 }
 0xcea   :  { %2619 = vsyncpa [#allocation5 + $0x1], 1 }

</bundles_post_ra>
